<compile_context>
chip_gen: v7x
topology: tpu7x:2x2x1
jax: 0.10.0
libtpu: 0.0.40
codegen_flags: <defaults>
</compile_context>

<pallas_src>
import functools

import jax
import jax.numpy as jnp
from jax.experimental import pallas as pl
from jax.experimental.pallas import tpu as pltpu


# ---------------------------------------------------------------------------
# Fused encoder kernel (gridless: everything is KB-scale and lives in VMEM)
# ---------------------------------------------------------------------------

def _encoder_kernel(*refs, num_layers):
    qst_ids_ref, ans_ids_ref, emb_qst_ref, emb_ans_ref = refs[:4]
    layer_refs = [refs[4 + 3 * l: 7 + 3 * l] for l in range(num_layers)]
    fc_w_ref = refs[4 + 3 * num_layers]              # (2*L*H, E) bf16
    fc_b_ref = refs[5 + 3 * num_layers]              # (1, E)     f32
    out_ref = refs[6 + 3 * num_layers]               # (B, E)     f32

    B = ans_ids_ref.shape[0]                         # padded batch (multiple of 8)
    Tq = qst_ids_ref.shape[0] // B
    T = Tq + 1
    H = layer_refs[0][1].shape[0]                    # w_hh_t is (H, 4H)
    Vq = emb_qst_ref.shape[0]
    Va = emb_ans_ref.shape[0]

    # ---- in-kernel embedding gather: one-hot @ table on the MXU ----
    def onehot(ids, vocab):                          # ids: (N, 1) int32 -> (N, vocab) bf16
        iota = jax.lax.broadcasted_iota(jnp.int32, (ids.shape[0], vocab), 1)
        return jnp.where(iota == ids, 1.0, 0.0).astype(jnp.bfloat16)

    ans_emb = jnp.dot(onehot(ans_ids_ref[...], Va), emb_ans_ref[...],
                      preferred_element_type=jnp.float32)            # (B, We)
    qst_emb = jnp.dot(onehot(qst_ids_ref[...], Vq), emb_qst_ref[...],
                      preferred_element_type=jnp.float32)            # (Tq*B, We)
    # Sequence-major layout: row t*B + b.  t=0 is the prepended answer token.
    x0 = jnp.tanh(jnp.concatenate([ans_emb, qst_emb], axis=0))        # (T*B, We) f32

    def run_layer(x_flat, w_ih_ref, w_hh_ref, b_ref):
        # Off-chain: ALL input projections + bias in one batched MXU matmul.
        gates_x = jnp.dot(x_flat.astype(jnp.bfloat16), w_ih_ref[...],
                          preferred_element_type=jnp.float32) + b_ref[...]   # (T*B, 4H)
        w_hh = w_hh_ref[...]                                                 # (H, 4H) f32

        h = jnp.zeros((B, H), jnp.float32)
        c = jnp.zeros((B, H), jnp.float32)
        hs = []
        for t in range(T):                           # unrolled; h/c stay in vregs (SSA)
            gates = gates_x[t * B:(t + 1) * B, :] + jnp.dot(
                h, w_hh, preferred_element_type=jnp.float32)                 # (B, 4H)
            # Two full-width EUP passes instead of four padded 32-lane ones.
            sig = jax.nn.sigmoid(gates)
            th = jnp.tanh(gates)
            # PyTorch LSTM gate order: i, f, g, o
            i = sig[:, 0 * H:1 * H]
            f = sig[:, 1 * H:2 * H]
            g = th[:, 2 * H:3 * H]
            o = sig[:, 3 * H:4 * H]
            c = f * c + i * g
            h = o * jnp.tanh(c)
            hs.append(h)
        return h, c, hs

    states = []
    x_in = x0
    for l in range(num_layers):
        w_ih_ref, w_hh_ref, b_ref = layer_refs[l]
        h_l, c_l, hs = run_layer(x_in, w_ih_ref, w_hh_ref, b_ref)
        states += [h_l, c_l]                         # layout: [h_0, c_0, h_1, c_1, ...]
        if l + 1 < num_layers:
            x_in = jnp.concatenate(hs, axis=0)       # (T*B, H), seq-major

    feat = jnp.tanh(jnp.concatenate(states, axis=-1))                 # (B, 2*L*H) f32
    out_ref[...] = (jnp.dot(feat.astype(jnp.bfloat16), fc_w_ref[...],
                            preferred_element_type=jnp.float32) + fc_b_ref[...])


def qst_ans_encoder_forward(params, question, answer, *, hidden_size, num_layers):
    del hidden_size  # derived inside the kernel from the weight shapes
    B, Tq = question.shape
    E = params['fc_b'].shape[-1]

    # Pad batch up to a sublane multiple (>= 8); padded rows use id 0 and are sliced off.
    B_pad = max(8, ((B + 7) // 8) * 8)
    pad = B_pad - B
    q = jnp.pad(question.astype(jnp.int32), ((0, pad), (0, 0)))
    a = jnp.pad(answer.astype(jnp.int32), ((0, pad),))
    qst_ids = q.T.reshape(Tq * B_pad, 1)             # seq-major flattened ids
    ans_ids = a.reshape(B_pad, 1)

    inputs = [qst_ids, ans_ids, params['emb_qst'], params['emb_ans']]
    for l in range(num_layers):
        lp = params['lstm'][l]
        inputs += [lp['w_ih_t'], lp['w_hh_t'], lp['b']]
    inputs += [params['fc_w_t'], params['fc_b']]

    vmem = pl.BlockSpec(memory_space=pltpu.MemorySpace.VMEM)
    out = pl.pallas_call(
        functools.partial(_encoder_kernel, num_layers=num_layers),
        out_shape=jax.ShapeDtypeStruct((B_pad, E), jnp.float32),
        in_specs=[vmem] * len(inputs),
        out_specs=vmem,
    )(*inputs)
    return out[:B]


# ---------------------------------------------------------------------------
# One-time parameter prep (hoisted out of the jitted forward)
# ---------------------------------------------------------------------------

def prepare_encoder_params(raw, num_layers):
    lstm = []
    for l in range(num_layers):
        lp = raw['lstm'][l]
        lstm.append(dict(
            w_ih_t=jnp.asarray(lp['w_ih'].T, jnp.bfloat16),           # (Din, 4H) off-chain matmul
            w_hh_t=jnp.asarray(lp['w_hh'].T, jnp.float32),            # (H,   4H) recurrent, f32
            b=(lp['b_ih'] + lp['b_hh']).astype(jnp.float32).reshape(1, -1)))
    return dict(
        emb_qst=raw['emb_qst'].astype(jnp.bfloat16),                  # (Vq, We) in-kernel gather
        emb_ans=raw['emb_ans'].astype(jnp.bfloat16),                  # (Va, We)
        lstm=lstm,
        fc_w_t=jnp.asarray(raw['fc_w'].T, jnp.bfloat16),              # (2LH, E)
        fc_b=raw['fc_b'].astype(jnp.float32).reshape(1, -1))


# ---------------------------------------------------------------------------
# Deterministic synthetic raw parameters (shapes follow the nn.Module __init__)
# ---------------------------------------------------------------------------

def init_encoder_params(key, cfg):
    ks = iter(jax.random.split(key, 64))

    def nrm(shape, scale=0.05):
        return scale * jax.random.normal(next(ks), shape, jnp.float32)

    We, H, L, E = (cfg['word_embed_size'], cfg['hidden_size'],
                   cfg['num_layers'], cfg['embed_size'])
    return dict(
        emb_qst=nrm((cfg['qst_vocab_size'], We), 0.1),
        emb_ans=nrm((cfg['ans_vocab_size'], We), 0.1),
        lstm=[dict(w_ih=nrm((4 * H, We if l == 0 else H)),
                   w_hh=nrm((4 * H, H)),
                   b_ih=nrm((4 * H,)),
                   b_hh=nrm((4 * H,))) for l in range(L)],
        fc_w=nrm((E, 2 * L * H)),
        fc_b=nrm((E,)),
    )


# ---------------------------------------------------------------------------
# Pure-JAX f32 reference (mirrors the PyTorch forward exactly)
# ---------------------------------------------------------------------------

def encoder_reference(raw, question, answer, hidden_size, num_layers):
    qst_emb = raw['emb_qst'][question]
    ans_vec = raw['emb_ans'][answer][:, None, :]
    x = jnp.tanh(jnp.concatenate([ans_vec, qst_emb], axis=1))
    x = jnp.transpose(x, (1, 0, 2))                        # (T, B, We)
    T, B, _ = x.shape
    H = hidden_size
    inp = x
    hs, cs = [], []
    for l in range(num_layers):
        lp = raw['lstm'][l]
        h = jnp.zeros((B, H), jnp.float32)
        c = jnp.zeros((B, H), jnp.float32)
        outs = []
        for t in range(T):
            gates = (inp[t] @ lp['w_ih'].T + lp['b_ih']
                     + h @ lp['w_hh'].T + lp['b_hh'])
            i, f, g, o = jnp.split(gates, 4, axis=-1)
            i = jax.nn.sigmoid(i)
            f = jax.nn.sigmoid(f)
            g = jnp.tanh(g)
            o = jax.nn.sigmoid(o)
            c = f * c + i * g
            h = o * jnp.tanh(c)
            outs.append(h)
        inp = jnp.stack(outs)
        hs.append(h)
        cs.append(c)
    hidden = jnp.stack(hs)                                 # (L, B, H)
    cell = jnp.stack(cs)                                   # (L, B, H)
    feat = jnp.concatenate([hidden, cell], axis=2)         # (L, B, 2H)
    feat = jnp.transpose(feat, (1, 0, 2)).reshape(B, -1)   # (B, 2LH)
    feat = jnp.tanh(feat)
    return feat @ raw['fc_w'].T + raw['fc_b']


# ---------------------------------------------------------------------------

if __name__ == "__main__":
    cfg = dict(qst_vocab_size=50, ans_vocab_size=30, word_embed_size=16,
               embed_size=32, num_layers=2, hidden_size=32)
    B, Tq = 2, 8

    raw = init_encoder_params(jax.random.PRNGKey(0), cfg)
    params = prepare_encoder_params(raw, cfg['num_layers'])

    k1, k2 = jax.random.split(jax.random.PRNGKey(0), 2)
    question = jax.random.randint(k1, (B, Tq), 0, cfg['qst_vocab_size'])
    answer = jax.random.randint(k2, (B,), 0, cfg['ans_vocab_size'])

    fwd = jax.jit(lambda p, q, a: qst_ans_encoder_forward(
        p, q, a, hidden_size=cfg['hidden_size'], num_layers=cfg['num_layers']))
    out = jax.block_until_ready(fwd(params, question, answer))

    ref = encoder_reference(raw, question, answer,
                            cfg['hidden_size'], cfg['num_layers'])

    assert out.shape == (B, cfg['embed_size']), out.shape
    assert out.dtype == jnp.float32
    assert bool(jnp.all(jnp.isfinite(out)))
    # bf16 embeddings / input-projection / fc operands + f32 accumulation & f32 recurrence.
    assert float(jnp.max(jnp.abs(out - ref))) < 5e-2
    print("KERNEL_OK")
</pallas_src>

<mosaic_0001>
module attributes {stable_mosaic.version = 11 : i64} {
  func.func @_encoder_kernel(%arg0: memref<64x1xi32, #tpu.memory_space<vmem>>, %arg1: memref<8x1xi32, #tpu.memory_space<vmem>>, %arg2: memref<50x16xbf16, #tpu.memory_space<vmem>>, %arg3: memref<30x16xbf16, #tpu.memory_space<vmem>>, %arg4: memref<16x128xbf16, #tpu.memory_space<vmem>>, %arg5: memref<32x128xf32, #tpu.memory_space<vmem>>, %arg6: memref<1x128xf32, #tpu.memory_space<vmem>>, %arg7: memref<32x128xbf16, #tpu.memory_space<vmem>>, %arg8: memref<32x128xf32, #tpu.memory_space<vmem>>, %arg9: memref<1x128xf32, #tpu.memory_space<vmem>>, %arg10: memref<128x32xbf16, #tpu.memory_space<vmem>>, %arg11: memref<1x32xf32, #tpu.memory_space<vmem>>, %arg12: memref<8x32xf32, #tpu.memory_space<vmem>>) attributes {dimension_semantics = [], scalar_prefetch = 0 : i64, scratch_operands = 0 : i64, tpu.core_type = #tpu.core_type<tc>} {
    %c0 = arith.constant 0 : index
    %c0_0 = arith.constant 0 : index
    %0 = vector.load %arg1[%c0, %c0_0] : memref<8x1xi32, #tpu.memory_space<vmem>>, vector<8x1xi32>
    %1 = tpu.iota {dimensions = array<i32: 1>} : vector<8x30xi32>
    %2 = vector.broadcast %0 : vector<8x1xi32> to vector<8x30xi32>
    %3 = arith.cmpi eq, %1, %2 : vector<8x30xi32>
    %cst = arith.constant 1.000000e+00 : f32
    %cst_1 = arith.constant 0.000000e+00 : f32
    %4 = vector.broadcast %cst : f32 to vector<8x30xf32>
    %5 = vector.broadcast %cst_1 : f32 to vector<8x30xf32>
    %6 = arith.select %3, %4, %5 : vector<8x30xi1>, vector<8x30xf32>
    %7 = arith.truncf %6 : vector<8x30xf32> to vector<8x30xbf16>
    %c0_2 = arith.constant 0 : index
    %c0_3 = arith.constant 0 : index
    %8 = vector.load %arg3[%c0_2, %c0_3] : memref<30x16xbf16, #tpu.memory_space<vmem>>, vector<30x16xbf16>
    %cst_4 = arith.constant dense<0.000000e+00> : vector<8x16xf32>
    %9 = tpu.matmul %7, %8, %cst_4 {dimension_numbers = #tpu.dot_dimension_numbers<[1], [0], [0], [1], [0, 0, 1, 1], [], []>} : vector<8x30xbf16>, vector<30x16xbf16>, vector<8x16xf32> -> vector<8x16xf32>
    %c0_5 = arith.constant 0 : index
    %c0_6 = arith.constant 0 : index
    %10 = vector.load %arg0[%c0_5, %c0_6] : memref<64x1xi32, #tpu.memory_space<vmem>>, vector<64x1xi32>
    %11 = tpu.iota {dimensions = array<i32: 1>} : vector<64x50xi32>
    %12 = vector.broadcast %10 : vector<64x1xi32> to vector<64x50xi32>
    %13 = arith.cmpi eq, %11, %12 : vector<64x50xi32>
    %cst_7 = arith.constant 1.000000e+00 : f32
    %cst_8 = arith.constant 0.000000e+00 : f32
    %14 = vector.broadcast %cst_7 : f32 to vector<64x50xf32>
    %15 = vector.broadcast %cst_8 : f32 to vector<64x50xf32>
    %16 = arith.select %13, %14, %15 : vector<64x50xi1>, vector<64x50xf32>
    %17 = arith.truncf %16 : vector<64x50xf32> to vector<64x50xbf16>
    %c0_9 = arith.constant 0 : index
    %c0_10 = arith.constant 0 : index
    %18 = vector.load %arg2[%c0_9, %c0_10] : memref<50x16xbf16, #tpu.memory_space<vmem>>, vector<50x16xbf16>
    %cst_11 = arith.constant dense<0.000000e+00> : vector<64x16xf32>
    %19 = tpu.matmul %17, %18, %cst_11 {dimension_numbers = #tpu.dot_dimension_numbers<[1], [0], [0], [1], [0, 0, 1, 1], [], []>} : vector<64x50xbf16>, vector<50x16xbf16>, vector<64x16xf32> -> vector<64x16xf32>
    %20 = tpu.concatenate %9, %19 in 0 : vector<8x16xf32>, vector<64x16xf32> -> vector<72x16xf32>
    %21 = math.tanh %20 : vector<72x16xf32>
    %22 = arith.truncf %21 : vector<72x16xf32> to vector<72x16xbf16>
    %c0_12 = arith.constant 0 : index
    %c0_13 = arith.constant 0 : index
    %23 = vector.load %arg4[%c0_12, %c0_13] : memref<16x128xbf16, #tpu.memory_space<vmem>>, vector<16x128xbf16>
    %cst_14 = arith.constant dense<0.000000e+00> : vector<72x128xf32>
    %24 = tpu.matmul %22, %23, %cst_14 {dimension_numbers = #tpu.dot_dimension_numbers<[1], [0], [0], [1], [0, 0, 1, 1], [], []>} : vector<72x16xbf16>, vector<16x128xbf16>, vector<72x128xf32> -> vector<72x128xf32>
    %c0_15 = arith.constant 0 : index
    %c0_16 = arith.constant 0 : index
    %25 = vector.load %arg6[%c0_15, %c0_16] : memref<1x128xf32, #tpu.memory_space<vmem>>, vector<1x128xf32>
    %26 = vector.broadcast %25 : vector<1x128xf32> to vector<72x128xf32>
    %27 = arith.addf %24, %26 : vector<72x128xf32>
    %c0_17 = arith.constant 0 : index
    %c0_18 = arith.constant 0 : index
    %28 = vector.load %arg5[%c0_17, %c0_18] : memref<32x128xf32, #tpu.memory_space<vmem>>, vector<32x128xf32>
    %cst_19 = arith.constant 0.000000e+00 : f32
    %29 = vector.broadcast %cst_19 : f32 to vector<8x32xf32>
    %cst_20 = arith.constant 0.000000e+00 : f32
    %30 = vector.broadcast %cst_20 : f32 to vector<8x32xf32>
    %31 = vector.extract_strided_slice %27 {offsets = [0, 0], sizes = [8, 128], strides = [1, 1]} : vector<72x128xf32> to vector<8x128xf32>
    %cst_21 = arith.constant dense<0.000000e+00> : vector<8x128xf32>
    %32 = tpu.matmul %29, %28, %cst_21 {dimension_numbers = #tpu.dot_dimension_numbers<[1], [0], [0], [1], [0, 0, 1, 1], [], []>} : vector<8x32xf32>, vector<32x128xf32>, vector<8x128xf32> -> vector<8x128xf32>
    %33 = arith.addf %31, %32 : vector<8x128xf32>
    %34 = arith.negf %33 : vector<8x128xf32>
    %35 = math.exp %34 : vector<8x128xf32>
    %cst_22 = arith.constant 1.000000e+00 : f32
    %36 = vector.broadcast %cst_22 : f32 to vector<8x128xf32>
    %37 = arith.addf %36, %35 : vector<8x128xf32>
    %38 = arith.divf %36, %37 : vector<8x128xf32>
    %39 = math.tanh %33 : vector<8x128xf32>
    %40 = vector.extract_strided_slice %38 {offsets = [0, 0], sizes = [8, 32], strides = [1, 1]} : vector<8x128xf32> to vector<8x32xf32>
    %41 = vector.extract_strided_slice %38 {offsets = [0, 32], sizes = [8, 32], strides = [1, 1]} : vector<8x128xf32> to vector<8x32xf32>
    %42 = vector.extract_strided_slice %39 {offsets = [0, 64], sizes = [8, 32], strides = [1, 1]} : vector<8x128xf32> to vector<8x32xf32>
    %43 = vector.extract_strided_slice %38 {offsets = [0, 96], sizes = [8, 32], strides = [1, 1]} : vector<8x128xf32> to vector<8x32xf32>
    %44 = arith.mulf %41, %30 : vector<8x32xf32>
    %45 = arith.mulf %40, %42 : vector<8x32xf32>
    %46 = arith.addf %44, %45 : vector<8x32xf32>
    %47 = math.tanh %46 : vector<8x32xf32>
    %48 = arith.mulf %43, %47 : vector<8x32xf32>
    %49 = vector.extract_strided_slice %27 {offsets = [8, 0], sizes = [8, 128], strides = [1, 1]} : vector<72x128xf32> to vector<8x128xf32>
    %cst_23 = arith.constant dense<0.000000e+00> : vector<8x128xf32>
    %50 = tpu.matmul %48, %28, %cst_23 {dimension_numbers = #tpu.dot_dimension_numbers<[1], [0], [0], [1], [0, 0, 1, 1], [], []>} : vector<8x32xf32>, vector<32x128xf32>, vector<8x128xf32> -> vector<8x128xf32>
    %51 = arith.addf %49, %50 : vector<8x128xf32>
    %52 = arith.negf %51 : vector<8x128xf32>
    %53 = math.exp %52 : vector<8x128xf32>
    %cst_24 = arith.constant 1.000000e+00 : f32
    %54 = vector.broadcast %cst_24 : f32 to vector<8x128xf32>
    %55 = arith.addf %54, %53 : vector<8x128xf32>
    %56 = arith.divf %54, %55 : vector<8x128xf32>
    %57 = math.tanh %51 : vector<8x128xf32>
    %58 = vector.extract_strided_slice %56 {offsets = [0, 0], sizes = [8, 32], strides = [1, 1]} : vector<8x128xf32> to vector<8x32xf32>
    %59 = vector.extract_strided_slice %56 {offsets = [0, 32], sizes = [8, 32], strides = [1, 1]} : vector<8x128xf32> to vector<8x32xf32>
    %60 = vector.extract_strided_slice %57 {offsets = [0, 64], sizes = [8, 32], strides = [1, 1]} : vector<8x128xf32> to vector<8x32xf32>
    %61 = vector.extract_strided_slice %56 {offsets = [0, 96], sizes = [8, 32], strides = [1, 1]} : vector<8x128xf32> to vector<8x32xf32>
    %62 = arith.mulf %59, %46 : vector<8x32xf32>
    %63 = arith.mulf %58, %60 : vector<8x32xf32>
    %64 = arith.addf %62, %63 : vector<8x32xf32>
    %65 = math.tanh %64 : vector<8x32xf32>
    %66 = arith.mulf %61, %65 : vector<8x32xf32>
    %67 = vector.extract_strided_slice %27 {offsets = [16, 0], sizes = [8, 128], strides = [1, 1]} : vector<72x128xf32> to vector<8x128xf32>
    %cst_25 = arith.constant dense<0.000000e+00> : vector<8x128xf32>
    %68 = tpu.matmul %66, %28, %cst_25 {dimension_numbers = #tpu.dot_dimension_numbers<[1], [0], [0], [1], [0, 0, 1, 1], [], []>} : vector<8x32xf32>, vector<32x128xf32>, vector<8x128xf32> -> vector<8x128xf32>
    %69 = arith.addf %67, %68 : vector<8x128xf32>
    %70 = arith.negf %69 : vector<8x128xf32>
    %71 = math.exp %70 : vector<8x128xf32>
    %cst_26 = arith.constant 1.000000e+00 : f32
    %72 = vector.broadcast %cst_26 : f32 to vector<8x128xf32>
    %73 = arith.addf %72, %71 : vector<8x128xf32>
    %74 = arith.divf %72, %73 : vector<8x128xf32>
    %75 = math.tanh %69 : vector<8x128xf32>
    %76 = vector.extract_strided_slice %74 {offsets = [0, 0], sizes = [8, 32], strides = [1, 1]} : vector<8x128xf32> to vector<8x32xf32>
    %77 = vector.extract_strided_slice %74 {offsets = [0, 32], sizes = [8, 32], strides = [1, 1]} : vector<8x128xf32> to vector<8x32xf32>
    %78 = vector.extract_strided_slice %75 {offsets = [0, 64], sizes = [8, 32], strides = [1, 1]} : vector<8x128xf32> to vector<8x32xf32>
    %79 = vector.extract_strided_slice %74 {offsets = [0, 96], sizes = [8, 32], strides = [1, 1]} : vector<8x128xf32> to vector<8x32xf32>
    %80 = arith.mulf %77, %64 : vector<8x32xf32>
    %81 = arith.mulf %76, %78 : vector<8x32xf32>
    %82 = arith.addf %80, %81 : vector<8x32xf32>
    %83 = math.tanh %82 : vector<8x32xf32>
    %84 = arith.mulf %79, %83 : vector<8x32xf32>
    %85 = vector.extract_strided_slice %27 {offsets = [24, 0], sizes = [8, 128], strides = [1, 1]} : vector<72x128xf32> to vector<8x128xf32>
    %cst_27 = arith.constant dense<0.000000e+00> : vector<8x128xf32>
    %86 = tpu.matmul %84, %28, %cst_27 {dimension_numbers = #tpu.dot_dimension_numbers<[1], [0], [0], [1], [0, 0, 1, 1], [], []>} : vector<8x32xf32>, vector<32x128xf32>, vector<8x128xf32> -> vector<8x128xf32>
    %87 = arith.addf %85, %86 : vector<8x128xf32>
    %88 = arith.negf %87 : vector<8x128xf32>
    %89 = math.exp %88 : vector<8x128xf32>
    %cst_28 = arith.constant 1.000000e+00 : f32
    %90 = vector.broadcast %cst_28 : f32 to vector<8x128xf32>
    %91 = arith.addf %90, %89 : vector<8x128xf32>
    %92 = arith.divf %90, %91 : vector<8x128xf32>
    %93 = math.tanh %87 : vector<8x128xf32>
    %94 = vector.extract_strided_slice %92 {offsets = [0, 0], sizes = [8, 32], strides = [1, 1]} : vector<8x128xf32> to vector<8x32xf32>
    %95 = vector.extract_strided_slice %92 {offsets = [0, 32], sizes = [8, 32], strides = [1, 1]} : vector<8x128xf32> to vector<8x32xf32>
    %96 = vector.extract_strided_slice %93 {offsets = [0, 64], sizes = [8, 32], strides = [1, 1]} : vector<8x128xf32> to vector<8x32xf32>
    %97 = vector.extract_strided_slice %92 {offsets = [0, 96], sizes = [8, 32], strides = [1, 1]} : vector<8x128xf32> to vector<8x32xf32>
    %98 = arith.mulf %95, %82 : vector<8x32xf32>
    %99 = arith.mulf %94, %96 : vector<8x32xf32>
    %100 = arith.addf %98, %99 : vector<8x32xf32>
    %101 = math.tanh %100 : vector<8x32xf32>
    %102 = arith.mulf %97, %101 : vector<8x32xf32>
    %103 = vector.extract_strided_slice %27 {offsets = [32, 0], sizes = [8, 128], strides = [1, 1]} : vector<72x128xf32> to vector<8x128xf32>
    %cst_29 = arith.constant dense<0.000000e+00> : vector<8x128xf32>
    %104 = tpu.matmul %102, %28, %cst_29 {dimension_numbers = #tpu.dot_dimension_numbers<[1], [0], [0], [1], [0, 0, 1, 1], [], []>} : vector<8x32xf32>, vector<32x128xf32>, vector<8x128xf32> -> vector<8x128xf32>
    %105 = arith.addf %103, %104 : vector<8x128xf32>
    %106 = arith.negf %105 : vector<8x128xf32>
    %107 = math.exp %106 : vector<8x128xf32>
    %cst_30 = arith.constant 1.000000e+00 : f32
    %108 = vector.broadcast %cst_30 : f32 to vector<8x128xf32>
    %109 = arith.addf %108, %107 : vector<8x128xf32>
    %110 = arith.divf %108, %109 : vector<8x128xf32>
    %111 = math.tanh %105 : vector<8x128xf32>
    %112 = vector.extract_strided_slice %110 {offsets = [0, 0], sizes = [8, 32], strides = [1, 1]} : vector<8x128xf32> to vector<8x32xf32>
    %113 = vector.extract_strided_slice %110 {offsets = [0, 32], sizes = [8, 32], strides = [1, 1]} : vector<8x128xf32> to vector<8x32xf32>
    %114 = vector.extract_strided_slice %111 {offsets = [0, 64], sizes = [8, 32], strides = [1, 1]} : vector<8x128xf32> to vector<8x32xf32>
    %115 = vector.extract_strided_slice %110 {offsets = [0, 96], sizes = [8, 32], strides = [1, 1]} : vector<8x128xf32> to vector<8x32xf32>
    %116 = arith.mulf %113, %100 : vector<8x32xf32>
    %117 = arith.mulf %112, %114 : vector<8x32xf32>
    %118 = arith.addf %116, %117 : vector<8x32xf32>
    %119 = math.tanh %118 : vector<8x32xf32>
    %120 = arith.mulf %115, %119 : vector<8x32xf32>
    %121 = vector.extract_strided_slice %27 {offsets = [40, 0], sizes = [8, 128], strides = [1, 1]} : vector<72x128xf32> to vector<8x128xf32>
    %cst_31 = arith.constant dense<0.000000e+00> : vector<8x128xf32>
    %122 = tpu.matmul %120, %28, %cst_31 {dimension_numbers = #tpu.dot_dimension_numbers<[1], [0], [0], [1], [0, 0, 1, 1], [], []>} : vector<8x32xf32>, vector<32x128xf32>, vector<8x128xf32> -> vector<8x128xf32>
    %123 = arith.addf %121, %122 : vector<8x128xf32>
    %124 = arith.negf %123 : vector<8x128xf32>
    %125 = math.exp %124 : vector<8x128xf32>
    %cst_32 = arith.constant 1.000000e+00 : f32
    %126 = vector.broadcast %cst_32 : f32 to vector<8x128xf32>
    %127 = arith.addf %126, %125 : vector<8x128xf32>
    %128 = arith.divf %126, %127 : vector<8x128xf32>
    %129 = math.tanh %123 : vector<8x128xf32>
    %130 = vector.extract_strided_slice %128 {offsets = [0, 0], sizes = [8, 32], strides = [1, 1]} : vector<8x128xf32> to vector<8x32xf32>
    %131 = vector.extract_strided_slice %128 {offsets = [0, 32], sizes = [8, 32], strides = [1, 1]} : vector<8x128xf32> to vector<8x32xf32>
    %132 = vector.extract_strided_slice %129 {offsets = [0, 64], sizes = [8, 32], strides = [1, 1]} : vector<8x128xf32> to vector<8x32xf32>
    %133 = vector.extract_strided_slice %128 {offsets = [0, 96], sizes = [8, 32], strides = [1, 1]} : vector<8x128xf32> to vector<8x32xf32>
    %134 = arith.mulf %131, %118 : vector<8x32xf32>
    %135 = arith.mulf %130, %132 : vector<8x32xf32>
    %136 = arith.addf %134, %135 : vector<8x32xf32>
    %137 = math.tanh %136 : vector<8x32xf32>
    %138 = arith.mulf %133, %137 : vector<8x32xf32>
    %139 = vector.extract_strided_slice %27 {offsets = [48, 0], sizes = [8, 128], strides = [1, 1]} : vector<72x128xf32> to vector<8x128xf32>
    %cst_33 = arith.constant dense<0.000000e+00> : vector<8x128xf32>
    %140 = tpu.matmul %138, %28, %cst_33 {dimension_numbers = #tpu.dot_dimension_numbers<[1], [0], [0], [1], [0, 0, 1, 1], [], []>} : vector<8x32xf32>, vector<32x128xf32>, vector<8x128xf32> -> vector<8x128xf32>
    %141 = arith.addf %139, %140 : vector<8x128xf32>
    %142 = arith.negf %141 : vector<8x128xf32>
    %143 = math.exp %142 : vector<8x128xf32>
    %cst_34 = arith.constant 1.000000e+00 : f32
    %144 = vector.broadcast %cst_34 : f32 to vector<8x128xf32>
    %145 = arith.addf %144, %143 : vector<8x128xf32>
    %146 = arith.divf %144, %145 : vector<8x128xf32>
    %147 = math.tanh %141 : vector<8x128xf32>
    %148 = vector.extract_strided_slice %146 {offsets = [0, 0], sizes = [8, 32], strides = [1, 1]} : vector<8x128xf32> to vector<8x32xf32>
    %149 = vector.extract_strided_slice %146 {offsets = [0, 32], sizes = [8, 32], strides = [1, 1]} : vector<8x128xf32> to vector<8x32xf32>
    %150 = vector.extract_strided_slice %147 {offsets = [0, 64], sizes = [8, 32], strides = [1, 1]} : vector<8x128xf32> to vector<8x32xf32>
    %151 = vector.extract_strided_slice %146 {offsets = [0, 96], sizes = [8, 32], strides = [1, 1]} : vector<8x128xf32> to vector<8x32xf32>
    %152 = arith.mulf %149, %136 : vector<8x32xf32>
    %153 = arith.mulf %148, %150 : vector<8x32xf32>
    %154 = arith.addf %152, %153 : vector<8x32xf32>
    %155 = math.tanh %154 : vector<8x32xf32>
    %156 = arith.mulf %151, %155 : vector<8x32xf32>
    %157 = vector.extract_strided_slice %27 {offsets = [56, 0], sizes = [8, 128], strides = [1, 1]} : vector<72x128xf32> to vector<8x128xf32>
    %cst_35 = arith.constant dense<0.000000e+00> : vector<8x128xf32>
    %158 = tpu.matmul %156, %28, %cst_35 {dimension_numbers = #tpu.dot_dimension_numbers<[1], [0], [0], [1], [0, 0, 1, 1], [], []>} : vector<8x32xf32>, vector<32x128xf32>, vector<8x128xf32> -> vector<8x128xf32>
    %159 = arith.addf %157, %158 : vector<8x128xf32>
    %160 = arith.negf %159 : vector<8x128xf32>
    %161 = math.exp %160 : vector<8x128xf32>
    %cst_36 = arith.constant 1.000000e+00 : f32
    %162 = vector.broadcast %cst_36 : f32 to vector<8x128xf32>
    %163 = arith.addf %162, %161 : vector<8x128xf32>
    %164 = arith.divf %162, %163 : vector<8x128xf32>
    %165 = math.tanh %159 : vector<8x128xf32>
    %166 = vector.extract_strided_slice %164 {offsets = [0, 0], sizes = [8, 32], strides = [1, 1]} : vector<8x128xf32> to vector<8x32xf32>
    %167 = vector.extract_strided_slice %164 {offsets = [0, 32], sizes = [8, 32], strides = [1, 1]} : vector<8x128xf32> to vector<8x32xf32>
    %168 = vector.extract_strided_slice %165 {offsets = [0, 64], sizes = [8, 32], strides = [1, 1]} : vector<8x128xf32> to vector<8x32xf32>
    %169 = vector.extract_strided_slice %164 {offsets = [0, 96], sizes = [8, 32], strides = [1, 1]} : vector<8x128xf32> to vector<8x32xf32>
    %170 = arith.mulf %167, %154 : vector<8x32xf32>
    %171 = arith.mulf %166, %168 : vector<8x32xf32>
    %172 = arith.addf %170, %171 : vector<8x32xf32>
    %173 = math.tanh %172 : vector<8x32xf32>
    %174 = arith.mulf %169, %173 : vector<8x32xf32>
    %175 = vector.extract_strided_slice %27 {offsets = [64, 0], sizes = [8, 128], strides = [1, 1]} : vector<72x128xf32> to vector<8x128xf32>
    %cst_37 = arith.constant dense<0.000000e+00> : vector<8x128xf32>
    %176 = tpu.matmul %174, %28, %cst_37 {dimension_numbers = #tpu.dot_dimension_numbers<[1], [0], [0], [1], [0, 0, 1, 1], [], []>} : vector<8x32xf32>, vector<32x128xf32>, vector<8x128xf32> -> vector<8x128xf32>
    %177 = arith.addf %175, %176 : vector<8x128xf32>
    %178 = arith.negf %177 : vector<8x128xf32>
    %179 = math.exp %178 : vector<8x128xf32>
    %cst_38 = arith.constant 1.000000e+00 : f32
    %180 = vector.broadcast %cst_38 : f32 to vector<8x128xf32>
    %181 = arith.addf %180, %179 : vector<8x128xf32>
    %182 = arith.divf %180, %181 : vector<8x128xf32>
    %183 = math.tanh %177 : vector<8x128xf32>
    %184 = vector.extract_strided_slice %182 {offsets = [0, 0], sizes = [8, 32], strides = [1, 1]} : vector<8x128xf32> to vector<8x32xf32>
    %185 = vector.extract_strided_slice %182 {offsets = [0, 32], sizes = [8, 32], strides = [1, 1]} : vector<8x128xf32> to vector<8x32xf32>
    %186 = vector.extract_strided_slice %183 {offsets = [0, 64], sizes = [8, 32], strides = [1, 1]} : vector<8x128xf32> to vector<8x32xf32>
    %187 = vector.extract_strided_slice %182 {offsets = [0, 96], sizes = [8, 32], strides = [1, 1]} : vector<8x128xf32> to vector<8x32xf32>
    %188 = arith.mulf %185, %172 : vector<8x32xf32>
    %189 = arith.mulf %184, %186 : vector<8x32xf32>
    %190 = arith.addf %188, %189 : vector<8x32xf32>
    %191 = math.tanh %190 : vector<8x32xf32>
    %192 = arith.mulf %187, %191 : vector<8x32xf32>
    %193 = tpu.concatenate %48, %66, %84, %102, %120, %138, %156, %174, %192 in 0 : vector<8x32xf32>, vector<8x32xf32>, vector<8x32xf32>, vector<8x32xf32>, vector<8x32xf32>, vector<8x32xf32>, vector<8x32xf32>, vector<8x32xf32>, vector<8x32xf32> -> vector<72x32xf32>
    %194 = arith.truncf %193 : vector<72x32xf32> to vector<72x32xbf16>
    %c0_39 = arith.constant 0 : index
    %c0_40 = arith.constant 0 : index
    %195 = vector.load %arg7[%c0_39, %c0_40] : memref<32x128xbf16, #tpu.memory_space<vmem>>, vector<32x128xbf16>
    %cst_41 = arith.constant dense<0.000000e+00> : vector<72x128xf32>
    %196 = tpu.matmul %194, %195, %cst_41 {dimension_numbers = #tpu.dot_dimension_numbers<[1], [0], [0], [1], [0, 0, 1, 1], [], []>} : vector<72x32xbf16>, vector<32x128xbf16>, vector<72x128xf32> -> vector<72x128xf32>
    %c0_42 = arith.constant 0 : index
    %c0_43 = arith.constant 0 : index
    %197 = vector.load %arg9[%c0_42, %c0_43] : memref<1x128xf32, #tpu.memory_space<vmem>>, vector<1x128xf32>
    %198 = vector.broadcast %197 : vector<1x128xf32> to vector<72x128xf32>
    %199 = arith.addf %196, %198 : vector<72x128xf32>
    %c0_44 = arith.constant 0 : index
    %c0_45 = arith.constant 0 : index
    %200 = vector.load %arg8[%c0_44, %c0_45] : memref<32x128xf32, #tpu.memory_space<vmem>>, vector<32x128xf32>
    %cst_46 = arith.constant 0.000000e+00 : f32
    %201 = vector.broadcast %cst_46 : f32 to vector<8x32xf32>
    %cst_47 = arith.constant 0.000000e+00 : f32
    %202 = vector.broadcast %cst_47 : f32 to vector<8x32xf32>
    %203 = vector.extract_strided_slice %199 {offsets = [0, 0], sizes = [8, 128], strides = [1, 1]} : vector<72x128xf32> to vector<8x128xf32>
    %cst_48 = arith.constant dense<0.000000e+00> : vector<8x128xf32>
    %204 = tpu.matmul %201, %200, %cst_48 {dimension_numbers = #tpu.dot_dimension_numbers<[1], [0], [0], [1], [0, 0, 1, 1], [], []>} : vector<8x32xf32>, vector<32x128xf32>, vector<8x128xf32> -> vector<8x128xf32>
    %205 = arith.addf %203, %204 : vector<8x128xf32>
    %206 = arith.negf %205 : vector<8x128xf32>
    %207 = math.exp %206 : vector<8x128xf32>
    %cst_49 = arith.constant 1.000000e+00 : f32
    %208 = vector.broadcast %cst_49 : f32 to vector<8x128xf32>
    %209 = arith.addf %208, %207 : vector<8x128xf32>
    %210 = arith.divf %208, %209 : vector<8x128xf32>
    %211 = math.tanh %205 : vector<8x128xf32>
    %212 = vector.extract_strided_slice %210 {offsets = [0, 0], sizes = [8, 32], strides = [1, 1]} : vector<8x128xf32> to vector<8x32xf32>
    %213 = vector.extract_strided_slice %210 {offsets = [0, 32], sizes = [8, 32], strides = [1, 1]} : vector<8x128xf32> to vector<8x32xf32>
    %214 = vector.extract_strided_slice %211 {offsets = [0, 64], sizes = [8, 32], strides = [1, 1]} : vector<8x128xf32> to vector<8x32xf32>
    %215 = vector.extract_strided_slice %210 {offsets = [0, 96], sizes = [8, 32], strides = [1, 1]} : vector<8x128xf32> to vector<8x32xf32>
    %216 = arith.mulf %213, %202 : vector<8x32xf32>
    %217 = arith.mulf %212, %214 : vector<8x32xf32>
    %218 = arith.addf %216, %217 : vector<8x32xf32>
    %219 = math.tanh %218 : vector<8x32xf32>
    %220 = arith.mulf %215, %219 : vector<8x32xf32>
    %221 = vector.extract_strided_slice %199 {offsets = [8, 0], sizes = [8, 128], strides = [1, 1]} : vector<72x128xf32> to vector<8x128xf32>
    %cst_50 = arith.constant dense<0.000000e+00> : vector<8x128xf32>
    %222 = tpu.matmul %220, %200, %cst_50 {dimension_numbers = #tpu.dot_dimension_numbers<[1], [0], [0], [1], [0, 0, 1, 1], [], []>} : vector<8x32xf32>, vector<32x128xf32>, vector<8x128xf32> -> vector<8x128xf32>
    %223 = arith.addf %221, %222 : vector<8x128xf32>
    %224 = arith.negf %223 : vector<8x128xf32>
    %225 = math.exp %224 : vector<8x128xf32>
    %cst_51 = arith.constant 1.000000e+00 : f32
    %226 = vector.broadcast %cst_51 : f32 to vector<8x128xf32>
    %227 = arith.addf %226, %225 : vector<8x128xf32>
    %228 = arith.divf %226, %227 : vector<8x128xf32>
    %229 = math.tanh %223 : vector<8x128xf32>
    %230 = vector.extract_strided_slice %228 {offsets = [0, 0], sizes = [8, 32], strides = [1, 1]} : vector<8x128xf32> to vector<8x32xf32>
    %231 = vector.extract_strided_slice %228 {offsets = [0, 32], sizes = [8, 32], strides = [1, 1]} : vector<8x128xf32> to vector<8x32xf32>
    %232 = vector.extract_strided_slice %229 {offsets = [0, 64], sizes = [8, 32], strides = [1, 1]} : vector<8x128xf32> to vector<8x32xf32>
    %233 = vector.extract_strided_slice %228 {offsets = [0, 96], sizes = [8, 32], strides = [1, 1]} : vector<8x128xf32> to vector<8x32xf32>
    %234 = arith.mulf %231, %218 : vector<8x32xf32>
    %235 = arith.mulf %230, %232 : vector<8x32xf32>
    %236 = arith.addf %234, %235 : vector<8x32xf32>
    %237 = math.tanh %236 : vector<8x32xf32>
    %238 = arith.mulf %233, %237 : vector<8x32xf32>
    %239 = vector.extract_strided_slice %199 {offsets = [16, 0], sizes = [8, 128], strides = [1, 1]} : vector<72x128xf32> to vector<8x128xf32>
    %cst_52 = arith.constant dense<0.000000e+00> : vector<8x128xf32>
    %240 = tpu.matmul %238, %200, %cst_52 {dimension_numbers = #tpu.dot_dimension_numbers<[1], [0], [0], [1], [0, 0, 1, 1], [], []>} : vector<8x32xf32>, vector<32x128xf32>, vector<8x128xf32> -> vector<8x128xf32>
    %241 = arith.addf %239, %240 : vector<8x128xf32>
    %242 = arith.negf %241 : vector<8x128xf32>
    %243 = math.exp %242 : vector<8x128xf32>
    %cst_53 = arith.constant 1.000000e+00 : f32
    %244 = vector.broadcast %cst_53 : f32 to vector<8x128xf32>
    %245 = arith.addf %244, %243 : vector<8x128xf32>
    %246 = arith.divf %244, %245 : vector<8x128xf32>
    %247 = math.tanh %241 : vector<8x128xf32>
    %248 = vector.extract_strided_slice %246 {offsets = [0, 0], sizes = [8, 32], strides = [1, 1]} : vector<8x128xf32> to vector<8x32xf32>
    %249 = vector.extract_strided_slice %246 {offsets = [0, 32], sizes = [8, 32], strides = [1, 1]} : vector<8x128xf32> to vector<8x32xf32>
    %250 = vector.extract_strided_slice %247 {offsets = [0, 64], sizes = [8, 32], strides = [1, 1]} : vector<8x128xf32> to vector<8x32xf32>
    %251 = vector.extract_strided_slice %246 {offsets = [0, 96], sizes = [8, 32], strides = [1, 1]} : vector<8x128xf32> to vector<8x32xf32>
    %252 = arith.mulf %249, %236 : vector<8x32xf32>
    %253 = arith.mulf %248, %250 : vector<8x32xf32>
    %254 = arith.addf %252, %253 : vector<8x32xf32>
    %255 = math.tanh %254 : vector<8x32xf32>
    %256 = arith.mulf %251, %255 : vector<8x32xf32>
    %257 = vector.extract_strided_slice %199 {offsets = [24, 0], sizes = [8, 128], strides = [1, 1]} : vector<72x128xf32> to vector<8x128xf32>
    %cst_54 = arith.constant dense<0.000000e+00> : vector<8x128xf32>
    %258 = tpu.matmul %256, %200, %cst_54 {dimension_numbers = #tpu.dot_dimension_numbers<[1], [0], [0], [1], [0, 0, 1, 1], [], []>} : vector<8x32xf32>, vector<32x128xf32>, vector<8x128xf32> -> vector<8x128xf32>
    %259 = arith.addf %257, %258 : vector<8x128xf32>
    %260 = arith.negf %259 : vector<8x128xf32>
    %261 = math.exp %260 : vector<8x128xf32>
    %cst_55 = arith.constant 1.000000e+00 : f32
    %262 = vector.broadcast %cst_55 : f32 to vector<8x128xf32>
    %263 = arith.addf %262, %261 : vector<8x128xf32>
    %264 = arith.divf %262, %263 : vector<8x128xf32>
    %265 = math.tanh %259 : vector<8x128xf32>
    %266 = vector.extract_strided_slice %264 {offsets = [0, 0], sizes = [8, 32], strides = [1, 1]} : vector<8x128xf32> to vector<8x32xf32>
    %267 = vector.extract_strided_slice %264 {offsets = [0, 32], sizes = [8, 32], strides = [1, 1]} : vector<8x128xf32> to vector<8x32xf32>
    %268 = vector.extract_strided_slice %265 {offsets = [0, 64], sizes = [8, 32], strides = [1, 1]} : vector<8x128xf32> to vector<8x32xf32>
    %269 = vector.extract_strided_slice %264 {offsets = [0, 96], sizes = [8, 32], strides = [1, 1]} : vector<8x128xf32> to vector<8x32xf32>
    %270 = arith.mulf %267, %254 : vector<8x32xf32>
    %271 = arith.mulf %266, %268 : vector<8x32xf32>
    %272 = arith.addf %270, %271 : vector<8x32xf32>
    %273 = math.tanh %272 : vector<8x32xf32>
    %274 = arith.mulf %269, %273 : vector<8x32xf32>
    %275 = vector.extract_strided_slice %199 {offsets = [32, 0], sizes = [8, 128], strides = [1, 1]} : vector<72x128xf32> to vector<8x128xf32>
    %cst_56 = arith.constant dense<0.000000e+00> : vector<8x128xf32>
    %276 = tpu.matmul %274, %200, %cst_56 {dimension_numbers = #tpu.dot_dimension_numbers<[1], [0], [0], [1], [0, 0, 1, 1], [], []>} : vector<8x32xf32>, vector<32x128xf32>, vector<8x128xf32> -> vector<8x128xf32>
    %277 = arith.addf %275, %276 : vector<8x128xf32>
    %278 = arith.negf %277 : vector<8x128xf32>
    %279 = math.exp %278 : vector<8x128xf32>
    %cst_57 = arith.constant 1.000000e+00 : f32
    %280 = vector.broadcast %cst_57 : f32 to vector<8x128xf32>
    %281 = arith.addf %280, %279 : vector<8x128xf32>
    %282 = arith.divf %280, %281 : vector<8x128xf32>
    %283 = math.tanh %277 : vector<8x128xf32>
    %284 = vector.extract_strided_slice %282 {offsets = [0, 0], sizes = [8, 32], strides = [1, 1]} : vector<8x128xf32> to vector<8x32xf32>
    %285 = vector.extract_strided_slice %282 {offsets = [0, 32], sizes = [8, 32], strides = [1, 1]} : vector<8x128xf32> to vector<8x32xf32>
    %286 = vector.extract_strided_slice %283 {offsets = [0, 64], sizes = [8, 32], strides = [1, 1]} : vector<8x128xf32> to vector<8x32xf32>
    %287 = vector.extract_strided_slice %282 {offsets = [0, 96], sizes = [8, 32], strides = [1, 1]} : vector<8x128xf32> to vector<8x32xf32>
    %288 = arith.mulf %285, %272 : vector<8x32xf32>
    %289 = arith.mulf %284, %286 : vector<8x32xf32>
    %290 = arith.addf %288, %289 : vector<8x32xf32>
    %291 = math.tanh %290 : vector<8x32xf32>
    %292 = arith.mulf %287, %291 : vector<8x32xf32>
    %293 = vector.extract_strided_slice %199 {offsets = [40, 0], sizes = [8, 128], strides = [1, 1]} : vector<72x128xf32> to vector<8x128xf32>
    %cst_58 = arith.constant dense<0.000000e+00> : vector<8x128xf32>
    %294 = tpu.matmul %292, %200, %cst_58 {dimension_numbers = #tpu.dot_dimension_numbers<[1], [0], [0], [1], [0, 0, 1, 1], [], []>} : vector<8x32xf32>, vector<32x128xf32>, vector<8x128xf32> -> vector<8x128xf32>
    %295 = arith.addf %293, %294 : vector<8x128xf32>
    %296 = arith.negf %295 : vector<8x128xf32>
    %297 = math.exp %296 : vector<8x128xf32>
    %cst_59 = arith.constant 1.000000e+00 : f32
    %298 = vector.broadcast %cst_59 : f32 to vector<8x128xf32>
    %299 = arith.addf %298, %297 : vector<8x128xf32>
    %300 = arith.divf %298, %299 : vector<8x128xf32>
    %301 = math.tanh %295 : vector<8x128xf32>
    %302 = vector.extract_strided_slice %300 {offsets = [0, 0], sizes = [8, 32], strides = [1, 1]} : vector<8x128xf32> to vector<8x32xf32>
    %303 = vector.extract_strided_slice %300 {offsets = [0, 32], sizes = [8, 32], strides = [1, 1]} : vector<8x128xf32> to vector<8x32xf32>
    %304 = vector.extract_strided_slice %301 {offsets = [0, 64], sizes = [8, 32], strides = [1, 1]} : vector<8x128xf32> to vector<8x32xf32>
    %305 = vector.extract_strided_slice %300 {offsets = [0, 96], sizes = [8, 32], strides = [1, 1]} : vector<8x128xf32> to vector<8x32xf32>
    %306 = arith.mulf %303, %290 : vector<8x32xf32>
    %307 = arith.mulf %302, %304 : vector<8x32xf32>
    %308 = arith.addf %306, %307 : vector<8x32xf32>
    %309 = math.tanh %308 : vector<8x32xf32>
    %310 = arith.mulf %305, %309 : vector<8x32xf32>
    %311 = vector.extract_strided_slice %199 {offsets = [48, 0], sizes = [8, 128], strides = [1, 1]} : vector<72x128xf32> to vector<8x128xf32>
    %cst_60 = arith.constant dense<0.000000e+00> : vector<8x128xf32>
    %312 = tpu.matmul %310, %200, %cst_60 {dimension_numbers = #tpu.dot_dimension_numbers<[1], [0], [0], [1], [0, 0, 1, 1], [], []>} : vector<8x32xf32>, vector<32x128xf32>, vector<8x128xf32> -> vector<8x128xf32>
    %313 = arith.addf %311, %312 : vector<8x128xf32>
    %314 = arith.negf %313 : vector<8x128xf32>
    %315 = math.exp %314 : vector<8x128xf32>
    %cst_61 = arith.constant 1.000000e+00 : f32
    %316 = vector.broadcast %cst_61 : f32 to vector<8x128xf32>
    %317 = arith.addf %316, %315 : vector<8x128xf32>
    %318 = arith.divf %316, %317 : vector<8x128xf32>
    %319 = math.tanh %313 : vector<8x128xf32>
    %320 = vector.extract_strided_slice %318 {offsets = [0, 0], sizes = [8, 32], strides = [1, 1]} : vector<8x128xf32> to vector<8x32xf32>
    %321 = vector.extract_strided_slice %318 {offsets = [0, 32], sizes = [8, 32], strides = [1, 1]} : vector<8x128xf32> to vector<8x32xf32>
    %322 = vector.extract_strided_slice %319 {offsets = [0, 64], sizes = [8, 32], strides = [1, 1]} : vector<8x128xf32> to vector<8x32xf32>
    %323 = vector.extract_strided_slice %318 {offsets = [0, 96], sizes = [8, 32], strides = [1, 1]} : vector<8x128xf32> to vector<8x32xf32>
    %324 = arith.mulf %321, %308 : vector<8x32xf32>
    %325 = arith.mulf %320, %322 : vector<8x32xf32>
    %326 = arith.addf %324, %325 : vector<8x32xf32>
    %327 = math.tanh %326 : vector<8x32xf32>
    %328 = arith.mulf %323, %327 : vector<8x32xf32>
    %329 = vector.extract_strided_slice %199 {offsets = [56, 0], sizes = [8, 128], strides = [1, 1]} : vector<72x128xf32> to vector<8x128xf32>
    %cst_62 = arith.constant dense<0.000000e+00> : vector<8x128xf32>
    %330 = tpu.matmul %328, %200, %cst_62 {dimension_numbers = #tpu.dot_dimension_numbers<[1], [0], [0], [1], [0, 0, 1, 1], [], []>} : vector<8x32xf32>, vector<32x128xf32>, vector<8x128xf32> -> vector<8x128xf32>
    %331 = arith.addf %329, %330 : vector<8x128xf32>
    %332 = arith.negf %331 : vector<8x128xf32>
    %333 = math.exp %332 : vector<8x128xf32>
    %cst_63 = arith.constant 1.000000e+00 : f32
    %334 = vector.broadcast %cst_63 : f32 to vector<8x128xf32>
    %335 = arith.addf %334, %333 : vector<8x128xf32>
    %336 = arith.divf %334, %335 : vector<8x128xf32>
    %337 = math.tanh %331 : vector<8x128xf32>
    %338 = vector.extract_strided_slice %336 {offsets = [0, 0], sizes = [8, 32], strides = [1, 1]} : vector<8x128xf32> to vector<8x32xf32>
    %339 = vector.extract_strided_slice %336 {offsets = [0, 32], sizes = [8, 32], strides = [1, 1]} : vector<8x128xf32> to vector<8x32xf32>
    %340 = vector.extract_strided_slice %337 {offsets = [0, 64], sizes = [8, 32], strides = [1, 1]} : vector<8x128xf32> to vector<8x32xf32>
    %341 = vector.extract_strided_slice %336 {offsets = [0, 96], sizes = [8, 32], strides = [1, 1]} : vector<8x128xf32> to vector<8x32xf32>
    %342 = arith.mulf %339, %326 : vector<8x32xf32>
    %343 = arith.mulf %338, %340 : vector<8x32xf32>
    %344 = arith.addf %342, %343 : vector<8x32xf32>
    %345 = math.tanh %344 : vector<8x32xf32>
    %346 = arith.mulf %341, %345 : vector<8x32xf32>
    %347 = vector.extract_strided_slice %199 {offsets = [64, 0], sizes = [8, 128], strides = [1, 1]} : vector<72x128xf32> to vector<8x128xf32>
    %cst_64 = arith.constant dense<0.000000e+00> : vector<8x128xf32>
    %348 = tpu.matmul %346, %200, %cst_64 {dimension_numbers = #tpu.dot_dimension_numbers<[1], [0], [0], [1], [0, 0, 1, 1], [], []>} : vector<8x32xf32>, vector<32x128xf32>, vector<8x128xf32> -> vector<8x128xf32>
    %349 = arith.addf %347, %348 : vector<8x128xf32>
    %350 = arith.negf %349 : vector<8x128xf32>
    %351 = math.exp %350 : vector<8x128xf32>
    %cst_65 = arith.constant 1.000000e+00 : f32
    %352 = vector.broadcast %cst_65 : f32 to vector<8x128xf32>
    %353 = arith.addf %352, %351 : vector<8x128xf32>
    %354 = arith.divf %352, %353 : vector<8x128xf32>
    %355 = math.tanh %349 : vector<8x128xf32>
    %356 = vector.extract_strided_slice %354 {offsets = [0, 0], sizes = [8, 32], strides = [1, 1]} : vector<8x128xf32> to vector<8x32xf32>
    %357 = vector.extract_strided_slice %354 {offsets = [0, 32], sizes = [8, 32], strides = [1, 1]} : vector<8x128xf32> to vector<8x32xf32>
    %358 = vector.extract_strided_slice %355 {offsets = [0, 64], sizes = [8, 32], strides = [1, 1]} : vector<8x128xf32> to vector<8x32xf32>
    %359 = vector.extract_strided_slice %354 {offsets = [0, 96], sizes = [8, 32], strides = [1, 1]} : vector<8x128xf32> to vector<8x32xf32>
    %360 = arith.mulf %357, %344 : vector<8x32xf32>
    %361 = arith.mulf %356, %358 : vector<8x32xf32>
    %362 = arith.addf %360, %361 : vector<8x32xf32>
    %363 = math.tanh %362 : vector<8x32xf32>
    %364 = arith.mulf %359, %363 : vector<8x32xf32>
    %365 = tpu.concatenate %192, %190, %364, %362 in 1 : vector<8x32xf32>, vector<8x32xf32>, vector<8x32xf32>, vector<8x32xf32> -> vector<8x128xf32>
    %366 = math.tanh %365 : vector<8x128xf32>
    %367 = arith.truncf %366 : vector<8x128xf32> to vector<8x128xbf16>
    %c0_66 = arith.constant 0 : index
    %c0_67 = arith.constant 0 : index
    %368 = vector.load %arg10[%c0_66, %c0_67] : memref<128x32xbf16, #tpu.memory_space<vmem>>, vector<128x32xbf16>
    %cst_68 = arith.constant dense<0.000000e+00> : vector<8x32xf32>
    %369 = tpu.matmul %367, %368, %cst_68 {dimension_numbers = #tpu.dot_dimension_numbers<[1], [0], [0], [1], [0, 0, 1, 1], [], []>} : vector<8x128xbf16>, vector<128x32xbf16>, vector<8x32xf32> -> vector<8x32xf32>
    %c0_69 = arith.constant 0 : index
    %c0_70 = arith.constant 0 : index
    %370 = vector.load %arg11[%c0_69, %c0_70] : memref<1x32xf32, #tpu.memory_space<vmem>>, vector<1x32xf32>
    %371 = vector.broadcast %370 : vector<1x32xf32> to vector<8x32xf32>
    %372 = arith.addf %369, %371 : vector<8x32xf32>
    %c0_71 = arith.constant 0 : index
    %c0_72 = arith.constant 0 : index
    %373 = vector.load %arg12[%c0_71, %c0_72] : memref<8x32xf32, #tpu.memory_space<vmem>>, vector<8x32xf32>
    tpu.vector_store %arg12[%c0_71, %c0_72], %372 {strides = array<i32>} : memref<8x32xf32, #tpu.memory_space<vmem>>, vector<8x32xf32>,
    return
  }
}

</mosaic_0001>

<bundles_post_ra>
// kernel: _lambda_.1
= control target key start
LH: loop header
LB: loop body
LE: loop exit
PB: predicated region body
PF: predicated region fallthrough
CT: control target
= control target key end

     0   :  { %v3241_v0 = vmov 0   ;;  %v3242_v5 = vmov 0.0   ;;  %vm207_vm0 = vcmask 1040384   ;;  %vm70_vm1 = vcmask 1046528   ;;  %s3246_s21 = smov 32   ;;  %s3247_s24 = smov 96   ;;  %s3791_s0 = inlined_call_operand.vmem [shape: s32[64,1], index: 0, kind: input, shape index: {}]   ;;  %s3792_s2 = inlined_call_operand.vmem [shape: bf16[50,16], index: 2, kind: input, shape index: {}]   ;;  %s3793_s1 = inlined_call_operand.vmem [shape: s32[8,1], index: 1, kind: input, shape index: {}]   ;;  %s3794_s3 = inlined_call_operand.vmem [shape: bf16[30,16], index: 3, kind: input, shape index: {}]   ;;  %s3795_s4 = inlined_call_operand.vmem [shape: bf16[16,128], index: 4, kind: input, shape index: {}]   ;;  %s3796_s5 = inlined_call_operand.vmem [shape: f32[32,128], index: 5, kind: input, shape index: {}]   ;;  %s3797_s6 = inlined_call_operand.vmem [shape: f32[1,128], index: 6, kind: input, shape index: {}]   ;;  %s3798_s7 = inlined_call_operand.vmem [shape: bf16[32,128], index: 7, kind: input, shape index: {}]   ;;  %s3799_s8 = inlined_call_operand.vmem [shape: f32[32,128], index: 8, kind: input, shape index: {}]   ;;  %s3800_s9 = inlined_call_operand.vmem [shape: f32[1,128], index: 9, kind: input, shape index: {}]   ;;  %s3801_s10 = inlined_call_operand.vmem [shape: bf16[128,32], index: 10, kind: input, shape index: {}]   ;;  %s3802_s11 = inlined_call_operand.vmem [shape: f32[1,32], index: 11, kind: input, shape index: {}]   ;;  %s3803_s12 = inlined_call_operand.vmem [shape: f32[8,32], index: 12, kind: output, shape index: {}]  }
   0x1   :  { %3059 = vset.pattern.permute.xlu1 %v3241_v0  ;;  %3058 = vset.pattern.permute.xlu0 %v3241_v0  ;;  %v116_v1 = vld [vmem:[%s3791_s0 + $0x10] sm:$0xff]  ;;  %v114_v2 = vld [vmem:[%s3791_s0] sm:$0xff]  ;;  %v117_v3 = vld [vmem:[%s3791_s0 + $0x18] sm:$0xff]  ;;  %vm3243_vm2 = vmmov 0   ;;  %v43_v19 = vlaneseq  ;;  %vm194_vm7 = vcmask 408576   ;;  %vm66_vm13 = vcmask 244736  }
   0x2   :  { %129 = vperm.xlu1 %3059, %v116_v1   ;;  %123 = vperm.xlu0 %3058, %v114_v2   ;;  %v115_v4 = vld [vmem:[%s3791_s0 + $0x8] sm:$0xff]  ;;  %v3060_v6 = vld [vmem:[%s3792_s2] sm:$0xff]   ;;  %v3062_v10 = vld [vmem:[%s3792_s2 + $0x10] sm:$0xff]   ;;  %v3244_v45 = vmov 0.0|0.0   ;;  %vm305_vm14 = vcmask 130048   ;;  %vm397_vm15 = vcmask 261120  }
   0x3   :  { %2652 = vmatprep.subr.bf16.mxu0 %v3242_v5  ;;  %v3061_v7 = vld [vmem:[%s3792_s2 + $0x8] sm:$0xff]   ;;  %v118_v9 = vld [vmem:[%s3791_s0 + $0x20] sm:$0xff]  ;;  %2660 = vmatprep.subr.bf16.mxu1 %v3060_v6  ;;  %v121_v11 = vld [vmem:[%s3791_s0 + $0x38] sm:$0xff]  ;;  %v44_v20 = vand.u32 127, %v43_v19 }
   0x4   :  { %v119_v8 = vld [vmem:[%s3791_s0 + $0x28] sm:$0xff]  ;;  %2661 = vmatpush3.bf16.msra.mxu1 %v3060_v6  ;;  %v120_v12 = vld [vmem:[%s3791_s0 + $0x30] sm:$0xff]  ;;  %v3063_v13 = vld [vmem:[%s3792_s2 + $0x18] ss:$0 sps:$4 sm:$0x11]   ;;  %2656 = vmatprep.mubr.msk.bf16.mxu0 %vm3243_vm2, %v3242_v5 }
   0x5   :  { %2662 = vmatprep.subr.bf16.mxu1 %v3061_v7  ;;  %v3064_v14 = vld [vmem:[%s3794_s3] sm:$0xff]   ;;  %v3065_v16 = vld [vmem:[%s3794_s3 + $0x8] sm:$0x7f]   ;;  %v209_v17 = vsel %vm207_vm0, %v3063_v13, 0 }
   0x6   :  { %132 = vperm.xlu1 %3059, %v117_v3   ;;  %126 = vperm.xlu0 %3058, %v115_v4   ;;  %v42_v15 = vld [vmem:[%s3793_s1] sm:$0xff]  ;;  %v72_v18 = vsel %vm70_vm1, %v3065_v16, 0  ;;  %v394_v1 = vld [vmem:[%s3796_s5 + $0x8] sm:$0xff]  ;;  %vm2340_vm1 = vcmask 785408  }
   0x7   :  { %2653 = vmatpush3.bf16.msra.mxu0 %v3064_v14  ;;  %v3066_v44 = vld [vmem:[%s3795_s4] sm:$0xff]  }
   0x8   :  { %2663 = vmatpush3.bf16.msra.mxu1 %v3061_v7  ;;  %2654 = vmatprep.subr.bf16.mxu0 %v3242_v5  ;;  %v393_v0 = vld [vmem:[%s3796_s5] sm:$0xff] }
   0x9   :  { %2664 = vmatprep.subr.bf16.mxu1 %v3062_v10 }
   0xa   :  { %138 = vperm.xlu1 %3059, %v119_v8   ;;  %135 = vperm.xlu0 %3058, %v118_v9   ;;  %v3392_v8 = vpack.c.bf16 %v394_v1, %v393_v0 }
   0xb   :  { %2655 = vmatpush3.bf16.msra.mxu0 %v72_v18 }
   0xc   :  { %2665 = vmatpush3.bf16.msra.mxu1 %v3062_v10  ;;  %2676 = vmatprep.subr.bf16.mxu0 %v3242_v5  ;;  %v395_v10 = vld [vmem:[%s3796_s5 + $0x10] sm:$0xff] }
   0xd   :  { %3050 = vmatprep.subr.msk.bf16.mxu1 %vm207_vm0, %v3063_v13  ;;  %vm2338_vm0 = vcmask 523264  }
   0xe   :  { %144 = vperm.xlu1 %3059, %v121_v11   ;;  %141 = vperm.xlu0 %3058, %v120_v12   ;;  %v396_v11 = vld [vmem:[%s3796_s5 + $0x18] sm:$0xff] }
   0xf   :  { %v3407_v12 = vpack.c.bf16 %v396_v11, %v395_v10 }
  0x10   :  { %2667 = vmatpush3.bf16.msra.mxu1 %v209_v17 }
  0x11   :  { %3048 = vmatprep.subr.bf16.mxu1 %v3242_v5 }
  0x12   :  { %46 = vperm.xlu0 %3058, %v42_v15   ;;  %v2471_v15 = vld [vmem:[%s3797_s6] ss:$0 sm:$0xff]  ;;  %s3245_s6 = smov 64  }
  0x81   :  { %v130_v21 = vpop.permute.xlu1 %129  ;;  %v124_v22 = vpop.permute.xlu0 %123 }
  0x82   :  { %vm148_vm3 = vcmp.eq.s32.totalorder %v44_v20, %v130_v21  ;;  %vm146_vm4 = vcmp.eq.s32.totalorder %v44_v20, %v124_v22 }
  0x83   :  { %v156_v25 = vsel %vm148_vm3, 1.0, %v3242_v5  ;;  %v154_v26 = vsel %vm146_vm4, 1.0, %v3242_v5 }
  0x85   :  { %v133_v23 = vpop.permute.xlu1 %132  ;;  %v127_v24 = vpop.permute.xlu0 %126 }
  0x86   :  { %vm149_vm5 = vcmp.eq.s32.totalorder %v44_v20, %v133_v23  ;;  %vm147_vm6 = vcmp.eq.s32.totalorder %v44_v20, %v127_v24 }
  0x87   :  { %v157_v27 = vsel %vm149_vm5, 1.0, %v3242_v5  ;;  %v155_v28 = vsel %vm147_vm6, 1.0, %v3242_v5 }
  0x88   :  { %v163_v29 = vpack.c.bf16 %v157_v27, %v156_v25  ;;  %v162_v30 = vpack.c.bf16 %v155_v28, %v154_v26 }
  0x89   :  { %v139_v31 = vpop.permute.xlu1 %138  ;;  %v136_v32 = vpop.permute.xlu0 %135 }
  0x8a   :  { %vm151_vm8 = vcmp.eq.s32.totalorder %v44_v20, %v139_v31  ;;  %vm150_vm9 = vcmp.eq.s32.totalorder %v44_v20, %v136_v32  ;;  %2668 = vmatprep.mubr.msk.bf16.mxu1 %vm194_vm7, %v162_v30 }
  0x8b   :  { %v159_v33 = vsel %vm151_vm8, 1.0, %v3242_v5  ;;  %v158_v34 = vsel %vm150_vm9, 1.0, %v3242_v5  ;;  %2669 = vmatmul.mubr.msk.bf16.vlgmr.msra.gmra.mrb[0].mxu1 %vm194_vm7, %v163_v29 }
  0x8c   :  { %v164_v35 = vpack.c.bf16 %v159_v33, %v158_v34  ;;  %3049 = vmatpush3.bf16.msra.mxu1 %v3066_v44 }
  0x8d   :  { %v145_v36 = vpop.permute.xlu1 %144  ;;  %v142_v37 = vpop.permute.xlu0 %141  ;;  %2940 = vmatprep.subr.bf16.mxu1 %v3244_v45 }
  0x8e   :  { %vm153_vm10 = vcmp.eq.s32.totalorder %v44_v20, %v145_v36  ;;  %vm152_vm11 = vcmp.eq.s32.totalorder %v44_v20, %v142_v37  ;;  %2672 = vmatprep.mubr.msk.bf16.mxu1 %vm194_vm7, %v164_v35 }
  0x8f   :  { %v161_v38 = vsel %vm153_vm10, 1.0, %v3242_v5  ;;  %v160_v39 = vsel %vm152_vm11, 1.0, %v3242_v5 }
  0x90   :  { %v165_v40 = vpack.c.bf16 %v161_v38, %v160_v39 }
  0x91   :  { %v47_v41 = vpop.permute.xlu0 %46 }
  0x92   :  { %vm48_vm12 = vcmp.eq.s32.totalorder %v44_v20, %v47_v41 }
  0x93   :  { %v49_v42 = vsel %vm48_vm12, 1.0, %v3242_v5  ;;  %2673 = vmatmul.mubr.msk.bf16.gmra.mrb[4].mxu1 %vm194_vm7, %v165_v40 }
  0x94   :  { %v50_v43 = vpack.c.bf16 %v49_v42, %v49_v42  ;;  %2690 = vmatprep.mubr.msk.bf16.mxu1 %vm3243_vm2, %v3242_v5 }
  0x96   :  { %2657 = vmatmul.mubr.msk.bf16.vlgmr.msra.gmra.mrb[0].mxu0 %vm66_vm13, %v50_v43 }
  0x97   :  { %2678 = vmatprep.mubr.msk.bf16.mxu0 %vm3243_vm2, %v3242_v5  ;;  %2677 = vmatpush3.bf16.msra.mxu0 %v3066_v44 }
  0x98   :  { %2958 = vmatprep.subr.bf16.mxu0 %v3244_v45 }
 0x15e   :  { %v2670_v46 = vpop.f32.mrb[0].mxu1 }
 0x15f   :  { %v245_v47 = vpop.f32.mrb[1].mxu1  ;;  %3077 = vtanh.f32 %v2670_v46 }
 0x160   :  { %v2671_v48 = vpop.f32.mrb[2].mxu1 }
 0x161   :  { %v248_v49 = vpop.f32.mrb[3].mxu1 }
 0x162   :  { %3079 = vtanh.f32 %v248_v49 }
 0x163   :  { %3081 = vtanh.f32 %v245_v47 }
 0x164   :  { %3083 = vtanh.f32 %v2671_v48 }
 0x166   :  { %v2674_v50 = vpop.f32.mrb[4].mxu1 }
 0x167   :  { %v261_v51 = vpop.f32.mrb[5].mxu1 }
 0x168   :  { %3085 = vtanh.f32 %v261_v51  ;;  %v2675_v52 = vpop.f32.mrb[6].mxu1 }
 0x169   :  { %3087 = vtanh.f32 %v2674_v50  ;;  %v108_v53 = vpop.f32.mrb[0].mxu0  ;;  %v264_v54 = vpop.f32.mrb[7].mxu1 }
 0x16a   :  { %3089 = vtanh.f32 %v108_v53  ;;  %v2658_v55 = vpop.f32.mrb[1].mxu0  ;;  %v3078_v56 = vpop.eup %3077 }
 0x16b   :  { %3091 = vtanh.f32 %v264_v54  ;;  %v111_v57 = vpop.f32.mrb[2].mxu0 }
 0x16c   :  { %v3080_v58 = vpop.eup %3079  ;;  %v2659_v59 = vpop.f32.mrb[3].mxu0  ;;  %3093 = vtanh.f32 %v2675_v52 }
 0x16d   :  { %v286_v60 = vpack.c.bf16 %v3078_v56, %v3080_v58  ;;  %v3082_v61 = vpop.eup %3081 }
 0x16e   :  { %v3084_v62 = vpop.eup %3083 }
 0x172   :  { %v3086_v63 = vpop.eup %3085 }
 0x173   :  { %v3088_v2 = vpop.eup %3087  ;;  %v287_v3 = vpack.c.bf16 %v3086_v63, %v3084_v62 }
 0x174   :  { %v3090_v4 = vpop.eup %3089 }
 0x175   :  { %v3092_v6 = vpop.eup %3091  ;;  %v285_v7 = vpack.c.bf16 %v3082_v61, %v3090_v4 }
 0x176   :  { %v288_v9 = vpack.c.bf16 %v3088_v2, %v3092_v6  ;;  %v3094_v13 = vpop.eup %3093 }
 0x177   :  { %2679 = vmatmul.mubr.msk.bf16.vlgmr.msra.gmra.mrb[4].mxu0 %vm305_vm14, %v285_v7  ;;  %v289_v14 = vpack.c.bf16 %v3094_v13, %v3094_v13 }
 0x178   :  { %2691 = vmatmul.mubr.msk.bf16.vlgmr.msra.gmra.mrb[8].mxu1 %vm305_vm14, %v288_v9  ;;  %2682 = vmatprep.mubr.msk.bf16.mxu0 %vm3243_vm2, %v3242_v5 }
 0x179   :  { %2942 = vmatpush3.bf16.msra.mxu1 %v3392_v8  ;;  %2694 = vmatprep.mubr.msk.bf16.mxu1 %vm3243_vm2, %v3242_v5 }
 0x17a   :  { %2943 = vmatprep.subr.bf16.mxu1 %v3244_v45  ;;  %2960 = vmatpush3.bf16.msra.mxu0 %v3392_v8 }
 0x17b   :  { %2961 = vmatprep.subr.bf16.mxu0 %v3244_v45 }
 0x17d   :  { %2945 = vmatpush3.bf16.msra.mxu1 %v3407_v12 }
 0x17e   :  { %2946 = vmatprep.subr.bf16.mxu1 %v3244_v45  ;;  %2963 = vmatpush3.bf16.msra.mxu0 %v3407_v12 }
 0x17f   :  { %2683 = vmatmul.mubr.msk.bf16.gmra.mrb[8].mxu0 %vm305_vm14, %v286_v60  ;;  %2970 = vmatprep.subr.bf16.mxu0 %v3244_v45 }
 0x180   :  { %2695 = vmatmul.mubr.msk.bf16.gmra.mrb[12].mxu1 %vm305_vm14, %v289_v14  ;;  %2686 = vmatprep.mubr.msk.bf16.mxu0 %vm3243_vm2, %v3242_v5 }
 0x181   :  { %2706 = vmatprep.mubr.msk.f32.mxu1 %vm3243_vm2, %v3242_v5 }
 0x187   :  { %2687 = vmatmul.mubr.msk.bf16.gmra.mrb[12].mxu0 %vm305_vm14, %v287_v3 }
 0x188   :  { %2707 = vmatmul.mubr.f32.vlgmr.msra.gmra.mrb[16].mxu1 %v3242_v5  ;;  %2739 = vmatprep.mubr.msk.f32.mxu0 %vm3243_vm2, %v3242_v5 }
 0x189   :  { %2948 = vmatpush3.bf16.msra.mxu1 %v3392_v8  ;;  %2717 = vmatprep.mubr.msk.f32.mxu1 %vm3243_vm2, %v3242_v5 }
 0x18a   :  { %2949 = vmatprep.subr.bf16.mxu1 %v3244_v45 }
 0x18d   :  { %2951 = vmatpush3.bf16.msra.mxu1 %v3407_v12 }
 0x18e   :  { %2952 = vmatprep.subr.bf16.mxu1 %v3244_v45 }
 0x24a   :  { %v355_v16 = vpop.f32.mrb[4].mxu0 }
 0x24b   :  { %v379_v17 = vpop.f32.mrb[8].mxu1  ;;  %v2680_v18 = vpop.f32.mrb[5].mxu0  ;;  %v356_v38 = vadd.f32 %v2471_v15, %v355_v16 }
 0x24c   :  { %v3435_v19 = vadd.f32 %v2471_v15, %v379_v17  ;;  %v2692_v20 = vpop.f32.mrb[9].mxu1  ;;  %v358_v21 = vpop.f32.mrb[6].mxu0 }
 0x24d   :  { %v359_v22 = vadd.f32 %v2471_v15, %v358_v21  ;;  %v382_v23 = vpop.f32.mrb[10].mxu1  ;;  %v2681_v24 = vpop.f32.mrb[7].mxu0 }
 0x24e   :  { %v3437_v25 = vadd.f32 %v2471_v15, %v382_v23  ;;  %v2693_v26 = vpop.f32.mrb[11].mxu1 }
 0x252   :  { %v363_v27 = vpop.f32.mrb[8].mxu0 }
 0x253   :  { %v3439_v28 = vadd.f32 %v2471_v15, %v363_v27  ;;  %v387_v29 = vpop.f32.mrb[12].mxu1  ;;  %v2684_v30 = vpop.f32.mrb[9].mxu0 }
 0x254   :  { %v3441_v31 = vadd.f32 %v2471_v15, %v387_v29  ;;  %v2696_v32 = vpop.f32.mrb[13].mxu1  ;;  %v366_v33 = vpop.f32.mrb[10].mxu0 }
 0x255   :  { %v3443_v34 = vadd.f32 %v2471_v15, %v366_v33  ;;  %v390_v35 = vpop.f32.mrb[14].mxu1  ;;  %v2685_v36 = vpop.f32.mrb[11].mxu0 }
 0x256   :  { %v2697_v37 = vpop.f32.mrb[15].mxu1 }
 0x25a   :  { %v371_v39 = vpop.f32.mrb[12].mxu0 }
 0x25b   :  { %v3445_v40 = vadd.f32 %v2471_v15, %v371_v39  ;;  %v467_v41 = vpop.f32.mrb[16].mxu1  ;;  %v2688_v42 = vpop.f32.mrb[13].mxu0 }
 0x25c   :  { %v471_v43 = vadd.f32 %v467_v41, %v356_v38  ;;  %v2708_v44 = vpop.f32.mrb[17].mxu1  ;;  %v374_v46 = vpop.f32.mrb[14].mxu0 }
 0x25d   :  { %v3447_v47 = vadd.f32 %v2471_v15, %v374_v46  ;;  %v2689_v48 = vpop.f32.mrb[15].mxu0 }
 0x25e   :  { %3095 = vtanh.f32 %v471_v43  ;;  %v2478_v50 = vmul.f32 -1.442695, %v471_v43 }
 0x260   :  { %3097 = vpow2.f32 %v2478_v50 }
 0x268   :  { %v3096_v49 = vpop.eup %3095 }
 0x269   :  { %481 = vrot.lane.b32.xlu1 %v3096_v49, %s3245_s6 }
 0x26a   :  { %v3098_v51 = vpop.eup %3097 }
 0x26b   :  { %v475_v52 = vadd.f32 1.0, %v3098_v51 }
 0x26d   :  { %3099 = vrcp.f32 %v475_v52 }
 0x277   :  { %v3100_v53 = vpop.eup %3099 }
 0x278   :  { %v479_v56 = vmul.f32 0.0, %v3100_v53 }
 0x2db   :  { %v482_v54 = vpop.permute.xlu1 %481 }
 0x2dc   :  { %v484_v55 = vmul.f32 %v3100_v53, %v482_v54 }
 0x2de   :  { %486 = vrot.lane.b32.xlu0 %v484_v55, %s3246_s21 }
 0x350   :  { %v487_v57 = vpop.permute.xlu0 %486 }
 0x351   :  { %v489_v58 = vadd.f32 %v487_v57, %v479_v56 }
 0x353   :  { %3101 = vtanh.f32 %v489_v58 }
 0x35d   :  { %v3102_v59 = vpop.eup %3101 }
 0x35e   :  { %492 = vrot.lane.b32.xlu1 %v3102_v59, %s3245_s6 }
 0x3d0   :  { %v493_v60 = vpop.permute.xlu1 %492 }
 0x3d1   :  { %v3452_v61 = vmul.f32 %v3100_v53, %v493_v60 }
 0x3d3   :  { %497 = vrot.lane.b32.xlu0 %v3452_v61, %s3246_s21 }
 0x445   :  { %v498_v62 = vpop.permute.xlu0 %497 }
 0x446   :  { %2718 = vmatmul.mubr.msk.f32.vlgmr.msra.gmra.mrb[18].mxu1 %vm397_vm15, %v498_v62 }
 0x447   :  { %2954 = vmatpush3.bf16.msra.mxu1 %v3392_v8  ;;  %2728 = vmatprep.mubr.msk.f32.mxu1 %vm3243_vm2, %v3242_v5 }
 0x448   :  { %2955 = vmatprep.subr.bf16.mxu1 %v3244_v45 }
 0x44b   :  { %2957 = vmatpush3.bf16.msra.mxu1 %v3407_v12 }
 0x44c   :  { %2964 = vmatprep.subr.bf16.mxu1 %v3244_v45 }
 0x519   :  { %v567_v63 = vpop.f32.mrb[18].mxu1 }
 0x51a   :  { %v571_v0 = vadd.f32 %v567_v63, %v359_v22  ;;  %v2719_v1 = vpop.f32.mrb[19].mxu1 }
 0x51c   :  { %3103 = vtanh.f32 %v571_v0  ;;  %v2480_v3 = vmul.f32 -1.442695, %v571_v0 }
 0x51e   :  { %3105 = vpow2.f32 %v2480_v3 }
 0x526   :  { %v3104_v2 = vpop.eup %3103 }
 0x527   :  { %581 = vrot.lane.b32.xlu1 %v3104_v2, %s3245_s6 }
 0x528   :  { %v3106_v4 = vpop.eup %3105 }
 0x529   :  { %v575_v6 = vadd.f32 1.0, %v3106_v4 }
 0x52b   :  { %3107 = vrcp.f32 %v575_v6 }
 0x535   :  { %v3108_v7 = vpop.eup %3107 }
 0x536   :  { %v579_v11 = vmul.f32 %v3108_v7, %v489_v58 }
 0x599   :  { %v582_v9 = vpop.permute.xlu1 %581 }
 0x59a   :  { %v584_v10 = vmul.f32 %v3108_v7, %v582_v9 }
 0x59c   :  { %586 = vrot.lane.b32.xlu0 %v584_v10, %s3246_s21 }
 0x60e   :  { %v587_v13 = vpop.permute.xlu0 %586 }
 0x60f   :  { %v589_v14 = vadd.f32 %v587_v13, %v579_v11 }
 0x611   :  { %3109 = vtanh.f32 %v589_v14 }
 0x61b   :  { %v3110_v15 = vpop.eup %3109 }
 0x61c   :  { %592 = vrot.lane.b32.xlu1 %v3110_v15, %s3245_s6 }
 0x68e   :  { %v593_v16 = vpop.permute.xlu1 %592 }
 0x68f   :  { %v3466_v17 = vmul.f32 %v3108_v7, %v593_v16 }
 0x691   :  { %597 = vrot.lane.b32.xlu0 %v3466_v17, %s3246_s21 }
 0x703   :  { %v598_v18 = vpop.permute.xlu0 %597 }
 0x704   :  { %2729 = vmatmul.mubr.msk.f32.vlgmr.msra.gmra.mrb[20].mxu1 %vm397_vm15, %v598_v18 }
 0x705   :  { %2966 = vmatpush3.bf16.msra.mxu1 %v3392_v8  ;;  %2750 = vmatprep.mubr.msk.f32.mxu1 %vm3243_vm2, %v3242_v5 }
 0x706   :  { %2967 = vmatprep.subr.bf16.mxu1 %v3244_v45 }
 0x709   :  { %2969 = vmatpush3.bf16.msra.mxu1 %v3407_v12 }
 0x70a   :  { %2976 = vmatprep.subr.bf16.mxu1 %v3244_v45 }
 0x7d7   :  { %v667_v20 = vpop.f32.mrb[20].mxu1 }
 0x7d8   :  { %v671_v21 = vadd.f32 %v667_v20, %v3439_v28  ;;  %v2730_v22 = vpop.f32.mrb[21].mxu1 }
 0x7da   :  { %3111 = vtanh.f32 %v671_v21  ;;  %v2482_v24 = vmul.f32 -1.442695, %v671_v21 }
 0x7dc   :  { %3113 = vpow2.f32 %v2482_v24 }
 0x7e4   :  { %v3112_v23 = vpop.eup %3111 }
 0x7e5   :  { %681 = vrot.lane.b32.xlu1 %v3112_v23, %s3245_s6 }
 0x7e6   :  { %v3114_v26 = vpop.eup %3113 }
 0x7e7   :  { %v675_v27 = vadd.f32 1.0, %v3114_v26 }
 0x7e9   :  { %3115 = vrcp.f32 %v675_v27 }
 0x7f3   :  { %v3116_v29 = vpop.eup %3115 }
 0x7f4   :  { %v679_v33 = vmul.f32 %v3116_v29, %v589_v14 }
 0x857   :  { %v682_v30 = vpop.permute.xlu1 %681 }
 0x858   :  { %v684_v32 = vmul.f32 %v3116_v29, %v682_v30 }
 0x85a   :  { %686 = vrot.lane.b32.xlu0 %v684_v32, %s3246_s21 }
 0x8cc   :  { %v687_v35 = vpop.permute.xlu0 %686 }
 0x8cd   :  { %v689_v36 = vadd.f32 %v687_v35, %v679_v33 }
 0x8cf   :  { %3117 = vtanh.f32 %v689_v36 }
 0x8d9   :  { %v3118_v28 = vpop.eup %3117 }
 0x8da   :  { %692 = vrot.lane.b32.xlu1 %v3118_v28, %s3245_s6 }
 0x94c   :  { %v693_v37 = vpop.permute.xlu1 %692 }
 0x94d   :  { %v3481_v38 = vmul.f32 %v3116_v29, %v693_v37 }
 0x94f   :  { %697 = vrot.lane.b32.xlu0 %v3481_v38, %s3246_s21 }
 0x9c1   :  { %v698_v39 = vpop.permute.xlu0 %697 }
 0x9c2   :  { %2740 = vmatmul.mubr.msk.f32.vlgmr.msra.gmra.mrb[16].mxu0 %vm397_vm15, %v698_v39 }
 0x9c3   :  { %2972 = vmatpush3.bf16.msra.mxu0 %v3392_v8  ;;  %2761 = vmatprep.mubr.msk.f32.mxu0 %vm3243_vm2, %v3242_v5 }
 0x9c4   :  { %2973 = vmatprep.subr.bf16.mxu0 %v3244_v45 }
 0x9c7   :  { %2975 = vmatpush3.bf16.msra.mxu0 %v3407_v12 }
 0x9c8   :  { %2982 = vmatprep.subr.bf16.mxu0 %v3244_v45 }
 0xa95   :  { %v767_v41 = vpop.f32.mrb[16].mxu0 }
 0xa96   :  { %v771_v42 = vadd.f32 %v767_v41, %v3443_v34  ;;  %v2741_v43 = vpop.f32.mrb[17].mxu0 }
 0xa98   :  { %3119 = vtanh.f32 %v771_v42  ;;  %v2484_v46 = vmul.f32 -1.442695, %v771_v42 }
 0xa9a   :  { %3121 = vpow2.f32 %v2484_v46 }
 0xaa2   :  { %v3120_v44 = vpop.eup %3119 }
 0xaa3   :  { %781 = vrot.lane.b32.xlu1 %v3120_v44, %s3245_s6 }
 0xaa4   :  { %v3122_v48 = vpop.eup %3121 }
 0xaa5   :  { %v775_v49 = vadd.f32 1.0, %v3122_v48 }
 0xaa7   :  { %3123 = vrcp.f32 %v775_v49 }
 0xab1   :  { %v3124_v50 = vpop.eup %3123 }
 0xab2   :  { %v779_v53 = vmul.f32 %v3124_v50, %v689_v36 }
 0xb15   :  { %v782_v51 = vpop.permute.xlu1 %781 }
 0xb16   :  { %v784_v52 = vmul.f32 %v3124_v50, %v782_v51 }
 0xb18   :  { %786 = vrot.lane.b32.xlu0 %v784_v52, %s3246_s21 }
 0xb8a   :  { %v787_v54 = vpop.permute.xlu0 %786 }
 0xb8b   :  { %v789_v55 = vadd.f32 %v787_v54, %v779_v53 }
 0xb8d   :  { %3125 = vtanh.f32 %v789_v55 }
 0xb97   :  { %v3126_v34 = vpop.eup %3125 }
 0xb98   :  { %792 = vrot.lane.b32.xlu1 %v3126_v34, %s3245_s6 }
 0xc0a   :  { %v793_v56 = vpop.permute.xlu1 %792 }
 0xc0b   :  { %v3496_v57 = vmul.f32 %v3124_v50, %v793_v56 }
 0xc0d   :  { %797 = vrot.lane.b32.xlu0 %v3496_v57, %s3246_s21 }
 0xc7f   :  { %v798_v58 = vpop.permute.xlu0 %797 }
 0xc80   :  { %2751 = vmatmul.mubr.msk.f32.vlgmr.msra.gmra.mrb[22].mxu1 %vm397_vm15, %v798_v58 }
 0xc81   :  { %2978 = vmatpush3.bf16.msra.mxu1 %v3392_v8  ;;  %2772 = vmatprep.mubr.msk.f32.mxu1 %vm3243_vm2, %v3242_v5 }
 0xc82   :  { %2979 = vmatprep.subr.bf16.mxu1 %v3244_v45 }
 0xc85   :  { %2981 = vmatpush3.bf16.msra.mxu1 %v3407_v12 }
 0xc86   :  { %2988 = vmatprep.subr.bf16.mxu1 %v3244_v45 }
 0xd53   :  { %v867_v59 = vpop.f32.mrb[22].mxu1 }
 0xd54   :  { %v871_v60 = vadd.f32 %v867_v59, %v3445_v40  ;;  %v2752_v62 = vpop.f32.mrb[23].mxu1 }
 0xd56   :  { %3127 = vtanh.f32 %v871_v60  ;;  %v2486_v0 = vmul.f32 -1.442695, %v871_v60 }
 0xd58   :  { %3129 = vpow2.f32 %v2486_v0 }
 0xd60   :  { %v3128_v63 = vpop.eup %3127 }
 0xd61   :  { %881 = vrot.lane.b32.xlu1 %v3128_v63, %s3245_s6 }
 0xd62   :  { %v3130_v1 = vpop.eup %3129 }
 0xd63   :  { %v875_v2 = vadd.f32 1.0, %v3130_v1  ;;  %v3067_v1 = vld [vmem:[%s3798_s7] sm:$0xff]  }
 0xd65   :  { %3131 = vrcp.f32 %v875_v2 }
 0xd6f   :  { %v3132_v3 = vpop.eup %3131 }
 0xd70   :  { %v879_v7 = vmul.f32 %v3132_v3, %v789_v55 }
 0xdd3   :  { %v882_v4 = vpop.permute.xlu1 %881 }
 0xdd4   :  { %v884_v6 = vmul.f32 %v3132_v3, %v882_v4 }
 0xdd6   :  { %886 = vrot.lane.b32.xlu0 %v884_v6, %s3246_s21 }
 0xe48   :  { %v887_v9 = vpop.permute.xlu0 %886 }
 0xe49   :  { %v889_v10 = vadd.f32 %v887_v9, %v879_v7  ;;  %v1296_v7 = vpack.c.bf16 %v3466_v17, %v3452_v61  ;;  %v1428_v61 = vld [vmem:[%s3799_s8 + $0x10] sm:$0xff]  ;;  %v1429_v17 = vld [vmem:[%s3799_s8 + $0x18] sm:$0xff] }
 0xe4b   :  { %3133 = vtanh.f32 %v889_v10 }
 0xe55   :  { %v3134_v40 = vpop.eup %3133 }
 0xe56   :  { %892 = vrot.lane.b32.xlu1 %v3134_v40, %s3245_s6  ;;  %v1426_v40 = vld [vmem:[%s3799_s8] sm:$0xff] }
 0xec8   :  { %v893_v11 = vpop.permute.xlu1 %892 }
 0xec9   :  { %v3511_v13 = vmul.f32 %v3132_v3, %v893_v11  ;;  %v3068_v3 = vld [vmem:[%s3798_s7 + $0x8] sm:$0xff]  }
 0xeca   :  { %v1427_v11 = vld [vmem:[%s3799_s8 + $0x8] sm:$0xff] }
 0xecb   :  { %897 = vrot.lane.b32.xlu0 %v3511_v13, %s3246_s21 }
 0xf3d   :  { %v898_v14 = vpop.permute.xlu0 %897 }
 0xf3e   :  { %2762 = vmatmul.mubr.msk.f32.vlgmr.msra.gmra.mrb[18].mxu0 %vm397_vm15, %v898_v14 }
 0xf3f   :  { %2984 = vmatpush3.bf16.msra.mxu0 %v3392_v8  ;;  %2783 = vmatprep.mubr.msk.f32.mxu0 %vm3243_vm2, %v3242_v5 }
 0xf40   :  { %2985 = vmatprep.subr.bf16.mxu0 %v3244_v45 }
 0xf43   :  { %2987 = vmatpush3.bf16.msra.mxu0 %v3407_v12 }
 0xf44   :  { %2797 = vmatprep.subr.bf16.mxu0 %v3242_v5 }
0x1011   :  { %v967_v15 = vpop.f32.mrb[18].mxu0 }
0x1012   :  { %v971_v16 = vadd.f32 %v967_v15, %v3447_v47  ;;  %v2763_v18 = vpop.f32.mrb[19].mxu0  ;;  %v3576_v15 = vpack.c.bf16 %v1427_v11, %v1426_v40 }
0x1014   :  { %3135 = vtanh.f32 %v971_v16  ;;  %v2488_v21 = vmul.f32 -1.442695, %v971_v16  ;;  %v3589_v16 = vpack.c.bf16 %v1429_v17, %v1428_v61 }
0x1016   :  { %3137 = vpow2.f32 %v2488_v21 }
0x101e   :  { %v3136_v20 = vpop.eup %3135 }
0x101f   :  { %981 = vrot.lane.b32.xlu1 %v3136_v20, %s3245_s6 }
0x1020   :  { %v3138_v22 = vpop.eup %3137 }
0x1021   :  { %v975_v23 = vadd.f32 1.0, %v3138_v22 }
0x1023   :  { %3139 = vrcp.f32 %v975_v23 }
0x102d   :  { %v3140_v24 = vpop.eup %3139 }
0x102e   :  { %v979_v29 = vmul.f32 %v3140_v24, %v889_v10 }
0x1091   :  { %v982_v26 = vpop.permute.xlu1 %981 }
0x1092   :  { %v984_v27 = vmul.f32 %v3140_v24, %v982_v26 }
0x1094   :  { %986 = vrot.lane.b32.xlu0 %v984_v27, %s3246_s21 }
0x1106   :  { %v987_v30 = vpop.permute.xlu0 %986 }
0x1107   :  { %v989_v32 = vadd.f32 %v987_v30, %v979_v29  ;;  %v3613_v29 = vld [vmem:[%s3800_s9] ss:$0 sm:$0xff] }
0x1109   :  { %3141 = vtanh.f32 %v989_v32 }
0x1113   :  { %v3142_v47 = vpop.eup %3141 }
0x1114   :  { %992 = vrot.lane.b32.xlu1 %v3142_v47, %s3245_s6 }
0x1186   :  { %v993_v33 = vpop.permute.xlu1 %992 }
0x1187   :  { %v3526_v35 = vmul.f32 %v3140_v24, %v993_v33 }
0x1189   :  { %997 = vrot.lane.b32.xlu0 %v3526_v35, %s3246_s21 }
0x11fb   :  { %v998_v36 = vpop.permute.xlu0 %997 }
0x11fc   :  { %2773 = vmatmul.mubr.msk.f32.vlgmr.msra.gmra.mrb[24].mxu1 %vm397_vm15, %v998_v36 }
0x11fd   :  { %2990 = vmatpush3.bf16.msra.mxu1 %v3392_v8  ;;  %2794 = vmatprep.mubr.msk.f32.mxu1 %vm3243_vm2, %v3242_v5 }
0x11fe   :  { %2991 = vmatprep.subr.bf16.mxu1 %v3244_v45 }
0x1201   :  { %2993 = vmatpush3.bf16.msra.mxu1 %v3407_v12 }
0x1202   :  { %2994 = vmatprep.subr.bf16.mxu1 %v3244_v45 }
0x12cf   :  { %v1067_v28 = vpop.f32.mrb[24].mxu1 }
0x12d0   :  { %v1071_v37 = vadd.f32 %v1067_v28, %v3435_v19  ;;  %v2774_v39 = vpop.f32.mrb[25].mxu1 }
0x12d2   :  { %3143 = vtanh.f32 %v1071_v37  ;;  %v2490_v42 = vmul.f32 -1.442695, %v1071_v37 }
0x12d4   :  { %3145 = vpow2.f32 %v2490_v42 }
0x12dc   :  { %v3144_v41 = vpop.eup %3143 }
0x12dd   :  { %1081 = vrot.lane.b32.xlu1 %v3144_v41, %s3245_s6 }
0x12de   :  { %v3146_v8 = vpop.eup %3145 }
0x12df   :  { %v1075_v43 = vadd.f32 1.0, %v3146_v8 }
0x12e1   :  { %3147 = vrcp.f32 %v1075_v43 }
0x12eb   :  { %v3148_v44 = vpop.eup %3147 }
0x12ec   :  { %v1079_v12 = vmul.f32 %v3148_v44, %v989_v32 }
0x134f   :  { %v1082_v46 = vpop.permute.xlu1 %1081 }
0x1350   :  { %v1084_v48 = vmul.f32 %v3148_v44, %v1082_v46 }
0x1352   :  { %1086 = vrot.lane.b32.xlu0 %v1084_v48, %s3246_s21 }
0x13c4   :  { %v1087_v49 = vpop.permute.xlu0 %1086 }
0x13c5   :  { %v1089_v50 = vadd.f32 %v1087_v49, %v1079_v12 }
0x13c7   :  { %3149 = vtanh.f32 %v1089_v50 }
0x13d1   :  { %v3150_v19 = vpop.eup %3149 }
0x13d2   :  { %1092 = vrot.lane.b32.xlu1 %v3150_v19, %s3245_s6 }
0x1444   :  { %v1093_v51 = vpop.permute.xlu1 %1092 }
0x1445   :  { %v3541_v52 = vmul.f32 %v3148_v44, %v1093_v51 }
0x1447   :  { %1097 = vrot.lane.b32.xlu0 %v3541_v52, %s3246_s21 }
0x14b9   :  { %v1098_v53 = vpop.permute.xlu0 %1097 }
0x14ba   :  { %2784 = vmatmul.mubr.msk.f32.vlgmr.msra.gmra.mrb[20].mxu0 %vm397_vm15, %v1098_v53 }
0x14bb   :  { %2801 = vmatprep.mubr.msk.bf16.mxu0 %vm3243_vm2, %v3242_v5  ;;  %2798 = vmatpush3.bf16.msra.mxu0 %v3067_v1 }
0x14bc   :  { %2799 = vmatprep.subr.bf16.mxu0 %v3242_v5 }
0x14bf   :  { %2800 = vmatpush3.bf16.msra.mxu0 %v3068_v3 }
0x14c0   :  { %3024 = vmatprep.subr.bf16.mxu0 %v3244_v45 }
0x158d   :  { %v1167_v54 = vpop.f32.mrb[20].mxu0 }
0x158e   :  { %v1171_v55 = vadd.f32 %v1167_v54, %v3437_v25  ;;  %v2785_v34 = vpop.f32.mrb[21].mxu0 }
0x1590   :  { %3151 = vtanh.f32 %v1171_v55  ;;  %v2492_v58 = vmul.f32 -1.442695, %v1171_v55 }
0x1592   :  { %3153 = vpow2.f32 %v2492_v58 }
0x159a   :  { %v3152_v56 = vpop.eup %3151 }
0x159b   :  { %1181 = vrot.lane.b32.xlu1 %v3152_v56, %s3245_s6 }
0x159c   :  { %v3154_v59 = vpop.eup %3153 }
0x159d   :  { %v1175_v60 = vadd.f32 1.0, %v3154_v59 }
0x159f   :  { %3155 = vrcp.f32 %v1175_v60 }
0x15a9   :  { %v3156_v62 = vpop.eup %3155 }
0x15aa   :  { %v1179_v25 = vmul.f32 %v3156_v62, %v1089_v50 }
0x160d   :  { %v1182_v63 = vpop.permute.xlu1 %1181 }
0x160e   :  { %v1184_v0 = vmul.f32 %v3156_v62, %v1182_v63 }
0x1610   :  { %1186 = vrot.lane.b32.xlu0 %v1184_v0, %s3246_s21 }
0x1682   :  { %v1187_v2 = vpop.permute.xlu0 %1186 }
0x1683   :  { %v3558_v4 = vadd.f32 %v1187_v2, %v1179_v25 }
0x1685   :  { %3157 = vtanh.f32 %v3558_v4 }
0x168f   :  { %v3158_v6 = vpop.eup %3157 }
0x1690   :  { %1192 = vrot.lane.b32.xlu1 %v3158_v6, %s3245_s6 }
0x1694   :  { %1317 = vrot.lane.b32.xlu1 %v1296_v7, %s3246_s21 }
0x1702   :  { %v1193_v9 = vpop.permute.xlu1 %1192 }
0x1703   :  { %v3566_v10 = vmul.f32 %v3156_v62, %v1193_v9  ;;  %v1297_v62 = vpack.c.bf16 %v3496_v57, %v3481_v38 }
0x1705   :  { %1197 = vrot.lane.b32.xlu0 %v3566_v10, %s3246_s21 }
0x1706   :  { %v1318_v14 = vpop.permute.xlu1 %1317 }
0x1707   :  { %2802 = vmatmul.mubr.msk.bf16.vlgmr.msra.gmra.mrb[24].mxu0 %vm397_vm15, %v1318_v14 }
0x1708   :  { %2805 = vmatprep.mubr.msk.bf16.mxu0 %vm3243_vm2, %v3242_v5  ;;  %3026 = vmatpush3.bf16.msra.mxu0 %v3576_v15 }
0x1709   :  { %3027 = vmatprep.subr.bf16.mxu0 %v3244_v45 }
0x170c   :  { %3029 = vmatpush3.bf16.msra.mxu0 %v3589_v16 }
0x170d   :  { %3036 = vmatprep.subr.bf16.mxu0 %v3244_v45 }
0x1777   :  { %v1198_v18 = vpop.permute.xlu0 %1197 }
0x1778   :  { %2795 = vmatmul.mubr.msk.f32.vlgmr.msra.gmra.mrb[26].mxu1 %vm397_vm15, %v1198_v18 }
0x1779   :  { %2996 = vmatpush3.bf16.msra.mxu1 %v3576_v15  ;;  %2829 = vmatprep.mubr.msk.f32.mxu1 %vm3243_vm2, %v3242_v5 }
0x177a   :  { %2997 = vmatprep.subr.bf16.mxu1 %v3244_v45 }
0x177d   :  { %2999 = vmatpush3.bf16.msra.mxu1 %v3589_v16 }
0x177e   :  { %3000 = vmatprep.subr.bf16.mxu1 %v3244_v45 }
0x1780   :  { %2830 = vmatmul.mubr.f32.vlgmr.msra.gmra.mrb[28].mxu1 %v3242_v5 }
0x1781   :  { %3002 = vmatpush3.bf16.msra.mxu1 %v3576_v15  ;;  %2840 = vmatprep.mubr.msk.f32.mxu1 %vm3243_vm2, %v3242_v5 }
0x1782   :  { %3003 = vmatprep.subr.bf16.mxu1 %v3244_v45 }
0x1785   :  { %3005 = vmatpush3.bf16.msra.mxu1 %v3589_v16 }
0x1786   :  { %3006 = vmatprep.subr.bf16.mxu1 %v3244_v45 }
0x17da   :  { %v1388_v20 = vpop.f32.mrb[24].mxu0 }
0x17db   :  { %v2803_v21 = vpop.f32.mrb[25].mxu0  ;;  %v1389_v30 = vadd.f32 %v3613_v29, %v1388_v20 }
0x17dc   :  { %v1391_v22 = vpop.f32.mrb[26].mxu0 }
0x17dd   :  { %v2804_v23 = vpop.f32.mrb[27].mxu0  ;;  %v1392_v50 = vadd.f32 %v3613_v29, %v1391_v22 }
0x184b   :  { %v1267_v24 = vpop.f32.mrb[26].mxu1 }
0x184c   :  { %v3608_v26 = vadd.f32 %v1267_v24, %v3441_v31  ;;  %v2796_v27 = vpop.f32.mrb[27].mxu1 }
0x1853   :  { %v1496_v32 = vpop.f32.mrb[28].mxu1 }
0x1854   :  { %v1500_v47 = vadd.f32 %v1496_v32, %v1389_v30  ;;  %v2831_v33 = vpop.f32.mrb[29].mxu1 }
0x1856   :  { %3159 = vtanh.f32 %v1500_v47  ;;  %v2503_v28 = vmul.f32 -1.442695, %v1500_v47 }
0x1858   :  { %3161 = vpow2.f32 %v2503_v28 }
0x1860   :  { %v3160_v36 = vpop.eup %3159 }
0x1861   :  { %1510 = vrot.lane.b32.xlu0 %v3160_v36, %s3245_s6 }
0x1862   :  { %v3162_v37 = vpop.eup %3161 }
0x1863   :  { %v1504_v31 = vadd.f32 1.0, %v3162_v37 }
0x1865   :  { %3163 = vrcp.f32 %v1504_v31 }
0x186f   :  { %v3164_v39 = vpop.eup %3163 }
0x1870   :  { %v1508_v8 = vmul.f32 0.0, %v3164_v39 }
0x18d3   :  { %v1511_v41 = vpop.permute.xlu0 %1510 }
0x18d4   :  { %v1513_v42 = vmul.f32 %v3164_v39, %v1511_v41 }
0x18d6   :  { %1515 = vrot.lane.b32.xlu1 %v1513_v42, %s3246_s21 }
0x1948   :  { %v1516_v43 = vpop.permute.xlu1 %1515 }
0x1949   :  { %v1518_v44 = vadd.f32 %v1516_v43, %v1508_v8 }
0x194b   :  { %3165 = vtanh.f32 %v1518_v44 }
0x1955   :  { %v3166_v46 = vpop.eup %3165 }
0x1956   :  { %1521 = vrot.lane.b32.xlu0 %v3166_v46, %s3245_s6 }
0x19c8   :  { %v1522_v48 = vpop.permute.xlu0 %1521 }
0x19c9   :  { %v1524_v12 = vmul.f32 %v3164_v39, %v1522_v48 }
0x19cb   :  { %1526 = vrot.lane.b32.xlu1 %v1524_v12, %s3246_s21 }
0x1a3d   :  { %v1527_v49 = vpop.permute.xlu1 %1526 }
0x1a3e   :  { %2841 = vmatmul.mubr.msk.f32.vlgmr.msra.gmra.mrb[30].mxu1 %vm397_vm15, %v1527_v49 }
0x1a3f   :  { %3008 = vmatpush3.bf16.msra.mxu1 %v3576_v15  ;;  %2851 = vmatprep.mubr.msk.f32.mxu1 %vm3243_vm2, %v3242_v5 }
0x1a40   :  { %3009 = vmatprep.subr.bf16.mxu1 %v3244_v45 }
0x1a43   :  { %3011 = vmatpush3.bf16.msra.mxu1 %v3589_v16 }
0x1a44   :  { %3012 = vmatprep.subr.bf16.mxu1 %v3244_v45 }
0x1b11   :  { %v1596_v19 = vpop.f32.mrb[30].mxu1 }
0x1b12   :  { %v1600_v51 = vadd.f32 %v1596_v19, %v1392_v50  ;;  %v2842_v53 = vpop.f32.mrb[31].mxu1  ;;  %v1298_v50 = vpack.c.bf16 %v3526_v35, %v3511_v13 }
0x1b14   :  { %3167 = vtanh.f32 %v1600_v51  ;;  %v2505_v55 = vmul.f32 -1.442695, %v1600_v51  ;;  %v2494_v51 = vmul.f32 -1.442695, %v3608_v26 }
0x1b16   :  { %3169 = vpow2.f32 %v2505_v55 }
0x1b1e   :  { %v3168_v54 = vpop.eup %3167 }
0x1b1f   :  { %1610 = vrot.lane.b32.xlu0 %v3168_v54, %s3245_s6 }
0x1b20   :  { %v3170_v34 = vpop.eup %3169 }
0x1b21   :  { %v1604_v56 = vadd.f32 1.0, %v3170_v34 }
0x1b23   :  { %3171 = vrcp.f32 %v1604_v56 }
0x1b2d   :  { %v3172_v58 = vpop.eup %3171 }
0x1b2e   :  { %v1608_v63 = vmul.f32 %v3172_v58, %v1518_v44 }
0x1b91   :  { %v1611_v59 = vpop.permute.xlu0 %1610 }
0x1b92   :  { %v1613_v60 = vmul.f32 %v3172_v58, %v1611_v59 }
0x1b94   :  { %1615 = vrot.lane.b32.xlu1 %v1613_v60, %s3246_s21 }
0x1b98   :  { %1319 = vrot.lane.b32.xlu1 %v1297_v62, %s3246_s21 }
0x1c06   :  { %v1616_v0 = vpop.permute.xlu1 %1615 }
0x1c07   :  { %v1618_v1 = vadd.f32 %v1616_v0, %v1608_v63 }
0x1c09   :  { %3173 = vtanh.f32 %v1618_v1 }
0x1c0a   :  { %v1320_v25 = vpop.permute.xlu1 %1319 }
0x1c0b   :  { %2806 = vmatmul.mubr.msk.bf16.gmra.mrb[28].mxu0 %vm397_vm15, %v1320_v25 }
0x1c0c   :  { %2809 = vmatprep.mubr.msk.bf16.mxu0 %vm3243_vm2, %v3242_v5 }
0x1c13   :  { %v3174_v2 = vpop.eup %3173 }
0x1c14   :  { %1621 = vrot.lane.b32.xlu0 %v3174_v2, %s3245_s6  ;;  %v1299_v2 = vpack.c.bf16 %v3566_v10, %v3541_v52 }
0x1c86   :  { %v1622_v3 = vpop.permute.xlu0 %1621 }
0x1c87   :  { %v1624_v6 = vmul.f32 %v3172_v58, %v1622_v3 }
0x1c89   :  { %1626 = vrot.lane.b32.xlu0 %v1624_v6, %s3246_s21 }
0x1cde   :  { %v1396_v38 = vpop.f32.mrb[28].mxu0 }
0x1cdf   :  { %v2807_v57 = vpop.f32.mrb[29].mxu0  ;;  %v1397_v11 = vadd.f32 %v3613_v29, %v1396_v38 }
0x1ce0   :  { %v1399_v7 = vpop.f32.mrb[30].mxu0 }
0x1ce1   :  { %v2808_v9 = vpop.f32.mrb[31].mxu0  ;;  %v1400_v31 = vadd.f32 %v3613_v29, %v1399_v7 }
0x1cfb   :  { %v1627_v40 = vpop.permute.xlu0 %1626 }
0x1cfc   :  { %2852 = vmatmul.mubr.msk.f32.vlgmr.msra.gmra.mrb[32].mxu1 %vm397_vm15, %v1627_v40 }
0x1cfd   :  { %3014 = vmatpush3.bf16.msra.mxu1 %v3576_v15  ;;  %2862 = vmatprep.mubr.msk.f32.mxu1 %vm3243_vm2, %v3242_v5 }
0x1cfe   :  { %3015 = vmatprep.subr.bf16.mxu1 %v3244_v45 }
0x1d01   :  { %3017 = vmatpush3.bf16.msra.mxu1 %v3589_v16 }
0x1d02   :  { %3018 = vmatprep.subr.bf16.mxu1 %v3244_v45 }
0x1dcf   :  { %v1696_v14 = vpop.f32.mrb[32].mxu1 }
0x1dd0   :  { %v1700_v61 = vadd.f32 %v1696_v14, %v1397_v11  ;;  %v2853_v17 = vpop.f32.mrb[33].mxu1 }
0x1dd2   :  { %3175 = vtanh.f32 %v1700_v61  ;;  %v2507_v20 = vmul.f32 -1.442695, %v1700_v61 }
0x1dd4   :  { %3177 = vpow2.f32 %v2507_v20 }
0x1ddc   :  { %v3176_v18 = vpop.eup %3175 }
0x1ddd   :  { %1710 = vrot.lane.b32.xlu1 %v3176_v18, %s3245_s6 }
0x1dde   :  { %v3178_v21 = vpop.eup %3177 }
0x1ddf   :  { %v1704_v22 = vadd.f32 1.0, %v3178_v21 }
0x1de1   :  { %3179 = vrcp.f32 %v1704_v22 }
0x1deb   :  { %v3180_v23 = vpop.eup %3179 }
0x1dec   :  { %v1708_v30 = vmul.f32 %v3180_v23, %v1618_v1 }
0x1e4f   :  { %v1711_v24 = vpop.permute.xlu1 %1710 }
0x1e50   :  { %v1713_v27 = vmul.f32 %v3180_v23, %v1711_v24 }
0x1e52   :  { %1715 = vrot.lane.b32.xlu0 %v1713_v27, %s3246_s21 }
0x1ec4   :  { %v1716_v32 = vpop.permute.xlu0 %1715 }
0x1ec5   :  { %v1718_v47 = vadd.f32 %v1716_v32, %v1708_v30 }
0x1ec7   :  { %3181 = vtanh.f32 %v1718_v47 }
0x1ed1   :  { %v3182_v33 = vpop.eup %3181 }
0x1ed2   :  { %1721 = vrot.lane.b32.xlu1 %v3182_v33, %s3245_s6 }
0x1f44   :  { %v1722_v36 = vpop.permute.xlu1 %1721 }
0x1f45   :  { %v1724_v28 = vmul.f32 %v3180_v23, %v1722_v36 }
0x1f47   :  { %1726 = vrot.lane.b32.xlu0 %v1724_v28, %s3246_s21 }
0x1fb9   :  { %v1727_v37 = vpop.permute.xlu0 %1726 }
0x1fba   :  { %2863 = vmatmul.mubr.msk.f32.vlgmr.msra.gmra.mrb[34].mxu1 %vm397_vm15, %v1727_v37 }
0x1fbb   :  { %3020 = vmatpush3.bf16.msra.mxu1 %v3576_v15  ;;  %2873 = vmatprep.mubr.msk.f32.mxu1 %vm3243_vm2, %v3242_v5 }
0x1fbc   :  { %3021 = vmatprep.subr.bf16.mxu1 %v3244_v45 }
0x1fbf   :  { %3023 = vmatpush3.bf16.msra.mxu1 %v3589_v16 }
0x1fc0   :  { %3030 = vmatprep.subr.bf16.mxu1 %v3244_v45 }
0x208d   :  { %v1796_v39 = vpop.f32.mrb[34].mxu1 }
0x208e   :  { %v1800_v41 = vadd.f32 %v1796_v39, %v1400_v31  ;;  %v2864_v42 = vpop.f32.mrb[35].mxu1 }
0x2090   :  { %3183 = vtanh.f32 %v1800_v41  ;;  %v2509_v43 = vmul.f32 -1.442695, %v1800_v41 }
0x2092   :  { %3185 = vpow2.f32 %v2509_v43 }
0x209a   :  { %v3184_v8 = vpop.eup %3183 }
0x209b   :  { %1810 = vrot.lane.b32.xlu1 %v3184_v8, %s3245_s6 }
0x209c   :  { %v3186_v44 = vpop.eup %3185 }
0x209d   :  { %v1804_v46 = vadd.f32 1.0, %v3186_v44 }
0x209f   :  { %3187 = vrcp.f32 %v1804_v46 }
0x20a0   :  { %3189 = vtanh.f32 %v3608_v26 }
0x20a1   :  { %3191 = vpow2.f32 %v2494_v51 }
0x20a9   :  { %v3188_v48 = vpop.eup %3187 }
0x20aa   :  { %v3190_v19 = vpop.eup %3189  ;;  %v1808_v55 = vmul.f32 %v3188_v48, %v1718_v47 }
0x20ab   :  { %v3192_v53 = vpop.eup %3191 }
0x20ac   :  { %v1275_v54 = vadd.f32 1.0, %v3192_v53 }
0x20ae   :  { %3193 = vrcp.f32 %v1275_v54 }
0x20b8   :  { %v3194_v13 = vpop.eup %3193 }
0x20b9   :  { %v1279_v60 = vmul.f32 %v3194_v13, %v3558_v4 }
0x210d   :  { %v1811_v12 = vpop.permute.xlu1 %1810 }
0x210e   :  { %v1813_v49 = vmul.f32 %v3188_v48, %v1811_v12 }
0x2110   :  { %1815 = vrot.lane.b32.xlu0 %v1813_v49, %s3246_s21 }
0x2114   :  { %1321 = vrot.lane.b32.xlu0 %v1298_v50, %s3246_s21 }
0x2118   :  { %1281 = vrot.lane.b32.xlu0 %v3190_v19, %s3245_s6 }
0x2182   :  { %v1816_v34 = vpop.permute.xlu0 %1815 }
0x2183   :  { %v1818_v56 = vadd.f32 %v1816_v34, %v1808_v55 }
0x2185   :  { %3195 = vtanh.f32 %v1818_v56 }
0x2186   :  { %v1322_v58 = vpop.permute.xlu0 %1321 }
0x2187   :  { %2810 = vmatmul.mubr.msk.bf16.gmra.mrb[32].mxu0 %vm397_vm15, %v1322_v58 }
0x2188   :  { %2813 = vmatprep.mubr.msk.bf16.mxu0 %vm3243_vm2, %v3242_v5 }
0x218a   :  { %v1282_v35 = vpop.permute.xlu0 %1281 }
0x218b   :  { %v1284_v59 = vmul.f32 %v3194_v13, %v1282_v35 }
0x218d   :  { %1286 = vrot.lane.b32.xlu0 %v1284_v59, %s3246_s21 }
0x218f   :  { %v3196_v26 = vpop.eup %3195 }
0x2190   :  { %1821 = vrot.lane.b32.xlu1 %v3196_v26, %s3245_s6 }
0x21ff   :  { %v1287_v62 = vpop.permute.xlu0 %1286 }
0x2200   :  { %v3672_v63 = vadd.f32 %v1287_v62, %v1279_v60 }
0x2202   :  { %3197 = vtanh.f32 %v3672_v63  ;;  %v1822_v0 = vpop.permute.xlu1 %1821 }
0x2203   :  { %v1824_v1 = vmul.f32 %v3188_v48, %v1822_v0 }
0x2205   :  { %1826 = vrot.lane.b32.xlu1 %v1824_v1, %s3246_s21 }
0x220c   :  { %v3198_v25 = vpop.eup %3197 }
0x220d   :  { %1292 = vrot.lane.b32.xlu0 %v3198_v25, %s3245_s6 }
0x2211   :  { %1323 = vrot.lane.b32.xlu0 %v1299_v2, %s3246_s21 }
0x225a   :  { %v1404_v3 = vpop.f32.mrb[32].mxu0 }
0x225b   :  { %v2811_v6 = vpop.f32.mrb[33].mxu0  ;;  %v1405_v7 = vadd.f32 %v3613_v29, %v1404_v3 }
0x225c   :  { %v1407_v4 = vpop.f32.mrb[34].mxu0 }
0x225d   :  { %v2812_v38 = vpop.f32.mrb[35].mxu0  ;;  %v1408_v48 = vadd.f32 %v3613_v29, %v1407_v4 }
0x2277   :  { %v1827_v57 = vpop.permute.xlu1 %1826 }
0x2278   :  { %2874 = vmatmul.mubr.msk.f32.vlgmr.msra.gmra.mrb[36].mxu1 %vm397_vm15, %v1827_v57 }
0x2279   :  { %3032 = vmatpush3.bf16.msra.mxu1 %v3576_v15  ;;  %2895 = vmatprep.mubr.msk.f32.mxu1 %vm3243_vm2, %v3242_v5 }
0x227a   :  { %3033 = vmatprep.subr.bf16.mxu1 %v3244_v45 }
0x227d   :  { %3035 = vmatpush3.bf16.msra.mxu1 %v3589_v16 }
0x227e   :  { %3042 = vmatprep.subr.bf16.mxu1 %v3244_v45 }
0x227f   :  { %v1293_v52 = vpop.permute.xlu0 %1292 }
0x2280   :  { %v3697_v36 = vmul.f32 %v3194_v13, %v1293_v52 }
0x2282   :  { %v1300_v37 = vpack.c.bf16 %v3697_v36, %v3697_v36 }
0x2283   :  { %v1324_v10 = vpop.permute.xlu0 %1323 }
0x2284   :  { %2814 = vmatmul.mubr.msk.bf16.gmra.mrb[36].mxu0 %vm397_vm15, %v1324_v10 }
0x2285   :  { %2817 = vmatprep.mubr.msk.bf16.mxu0 %vm3243_vm2, %v3242_v5 }
0x234b   :  { %v1896_v9 = vpop.f32.mrb[36].mxu1 }
0x234c   :  { %v1900_v40 = vadd.f32 %v1896_v9, %v1405_v7  ;;  %v2875_v11 = vpop.f32.mrb[37].mxu1 }
0x234e   :  { %3199 = vtanh.f32 %v1900_v40  ;;  %v2511_v21 = vmul.f32 -1.442695, %v1900_v40 }
0x2350   :  { %3201 = vpow2.f32 %v2511_v21 }
0x2357   :  { %v3691_v14 = vpop.f32.mrb[36].mxu0 }
0x2358   :  { %v3200_v61 = vpop.eup %3199  ;;  %v2815_v17 = vpop.f32.mrb[37].mxu0  ;;  %v1413_v0 = vadd.f32 %v3613_v29, %v3691_v14 }
0x2359   :  { %1910 = vrot.lane.b32.xlu1 %v3200_v61, %s3245_s6  ;;  %v3694_v18 = vpop.f32.mrb[38].mxu0 }
0x235a   :  { %v2816_v20 = vpop.f32.mrb[39].mxu0  ;;  %v3202_v22 = vpop.eup %3201  ;;  %v1416_v14 = vadd.f32 %v3613_v29, %v3694_v18 }
0x235b   :  { %v1904_v23 = vadd.f32 1.0, %v3202_v22 }
0x235d   :  { %3203 = vrcp.f32 %v1904_v23 }
0x2367   :  { %v3204_v24 = vpop.eup %3203 }
0x2368   :  { %v1908_v32 = vmul.f32 %v3204_v24, %v1818_v56 }
0x23cb   :  { %v1911_v27 = vpop.permute.xlu1 %1910 }
0x23cc   :  { %v1913_v30 = vmul.f32 %v3204_v24, %v1911_v27 }
0x23ce   :  { %1915 = vrot.lane.b32.xlu1 %v1913_v30, %s3246_s21 }
0x2440   :  { %v1916_v47 = vpop.permute.xlu1 %1915 }
0x2441   :  { %v1918_v33 = vadd.f32 %v1916_v47, %v1908_v32 }
0x2443   :  { %3205 = vtanh.f32 %v1918_v33 }
0x244d   :  { %v3206_v28 = vpop.eup %3205 }
0x244e   :  { %1921 = vrot.lane.b32.xlu1 %v3206_v28, %s3245_s6 }
0x2452   :  { %1325 = vrot.lane.b32.xlu1 %v1300_v37, %s3246_s21 }
0x24c0   :  { %v1922_v31 = vpop.permute.xlu1 %1921 }
0x24c1   :  { %v1924_v39 = vmul.f32 %v3204_v24, %v1922_v31 }
0x24c3   :  { %1926 = vrot.lane.b32.xlu0 %v1924_v39, %s3246_s21 }
0x24c4   :  { %v1326_v41 = vpop.permute.xlu1 %1325 }
0x24c5   :  { %2818 = vmatmul.mubr.msk.bf16.gmra.mrb[40].mxu0 %vm397_vm15, %v1326_v41 }
0x24c6   :  { %2884 = vmatprep.mubr.msk.f32.mxu0 %vm3243_vm2, %v3242_v5 }
0x2535   :  { %v1927_v42 = vpop.permute.xlu0 %1926 }
0x2536   :  { %2885 = vmatmul.mubr.msk.f32.vlgmr.msra.gmra.mrb[22].mxu0 %vm397_vm15, %v1927_v42 }
0x2537   :  { %3038 = vmatpush3.bf16.msra.mxu0 %v3576_v15  ;;  %2906 = vmatprep.mubr.msk.f32.mxu0 %vm3243_vm2, %v3242_v5 }
0x2538   :  { %3039 = vmatprep.subr.bf16.mxu0 %v3244_v45 }
0x253b   :  { %3041 = vmatpush3.bf16.msra.mxu0 %v3589_v16 }
0x253c   :  { %2920 = vmatprep.subr.bf16.mxu0 %v3242_v5 }
0x2598   :  { %v3714_v8 = vpop.f32.mrb[40].mxu0 }
0x2599   :  { %v2819_v43 = vpop.f32.mrb[41].mxu0  ;;  %v1421_v41 = vadd.f32 %v3613_v29, %v3714_v8 }
0x259a   :  { %v1423_v44 = vpop.f32.mrb[42].mxu0 }
0x259b   :  { %v2820_v46 = vpop.f32.mrb[43].mxu0 }
0x2609   :  { %v1996_v12 = vpop.f32.mrb[22].mxu0 }
0x260a   :  { %v2000_v49 = vadd.f32 %v1996_v12, %v1408_v48  ;;  %v2886_v50 = vpop.f32.mrb[23].mxu0 }
0x260c   :  { %3207 = vtanh.f32 %v2000_v49  ;;  %v2513_v51 = vmul.f32 -1.442695, %v2000_v49 }
0x260e   :  { %3209 = vpow2.f32 %v2513_v51 }
0x2616   :  { %v3208_v19 = vpop.eup %3207 }
0x2617   :  { %2010 = vrot.lane.b32.xlu1 %v3208_v19, %s3245_s6 }
0x2618   :  { %v3210_v53 = vpop.eup %3209 }
0x2619   :  { %v2004_v54 = vadd.f32 1.0, %v3210_v53 }
0x261b   :  { %3211 = vrcp.f32 %v2004_v54  ;;  %v3069_v54 = vld [vmem:[%s3801_s10] sm:$0xff]  }
0x2625   :  { %v3212_v55 = vpop.eup %3211 }
0x2626   :  { %v2008_v58 = vmul.f32 %v3212_v55, %v1918_v33 }
0x2689   :  { %v2011_v34 = vpop.permute.xlu1 %2010 }
0x268a   :  { %v2013_v56 = vmul.f32 %v3212_v55, %v2011_v34 }
0x268c   :  { %2015 = vrot.lane.b32.xlu0 %v2013_v56, %s3246_s21  ;;  %v3072_v56 = vld [vmem:[%s3801_s10 + $0x18] sm:$0xff]  }
0x26fe   :  { %v2016_v13 = vpop.permute.xlu0 %2015 }
0x26ff   :  { %v2018_v35 = vadd.f32 %v2016_v13, %v2008_v58  ;;  %v3073_v58 = vld [vmem:[%s3801_s10 + $0x20] sm:$0xff]   ;;  %v3074_v13 = vld [vmem:[%s3801_s10 + $0x28] sm:$0xff]  }
0x2701   :  { %3213 = vtanh.f32 %v2018_v35 }
0x270b   :  { %v3214_v59 = vpop.eup %3213 }
0x270c   :  { %2021 = vrot.lane.b32.xlu1 %v3214_v59, %s3245_s6 }
0x277e   :  { %v2022_v26 = vpop.permute.xlu1 %2021 }
0x277f   :  { %v2024_v60 = vmul.f32 %v3212_v55, %v2022_v26  ;;  %v3070_v55 = vld [vmem:[%s3801_s10 + $0x8] sm:$0xff]   ;;  %v3076_v26 = vld [vmem:[%s3801_s10 + $0x38] sm:$0xff]  }
0x2781   :  { %2026 = vrot.lane.b32.xlu0 %v2024_v60, %s3246_s21 }
0x27f3   :  { %v2027_v62 = vpop.permute.xlu0 %2026 }
0x27f4   :  { %2896 = vmatmul.mubr.msk.f32.vlgmr.msra.gmra.mrb[38].mxu1 %vm397_vm15, %v2027_v62 }
0x27f5   :  { %3044 = vmatpush3.bf16.msra.mxu1 %v3576_v15  ;;  %2917 = vmatprep.mubr.msk.f32.mxu1 %vm3243_vm2, %v3242_v5 }
0x27f6   :  { %3045 = vmatprep.subr.bf16.mxu1 %v3244_v45 }
0x27f9   :  { %3047 = vmatpush3.bf16.msra.mxu1 %v3589_v16 }
0x28c7   :  { %v2096_v1 = vpop.f32.mrb[38].mxu1 }
0x28c8   :  { %v2100_v25 = vadd.f32 %v2096_v1, %v1413_v0  ;;  %v2897_v2 = vpop.f32.mrb[39].mxu1 }
0x28ca   :  { %3215 = vtanh.f32 %v2100_v25  ;;  %v2515_v6 = vmul.f32 -1.442695, %v2100_v25 }
0x28cc   :  { %3217 = vpow2.f32 %v2515_v6 }
0x28d4   :  { %v3216_v3 = vpop.eup %3215 }
0x28d5   :  { %2110 = vrot.lane.b32.xlu1 %v3216_v3, %s3245_s6 }
0x28d6   :  { %v3218_v15 = vpop.eup %3217 }
0x28d7   :  { %v2104_v4 = vadd.f32 1.0, %v3218_v15  ;;  %v2520_v15 = vld [vmem:[%s3802_s11] ss:$0 sm:$0xff] }
0x28d9   :  { %3219 = vrcp.f32 %v2104_v4 }
0x28e3   :  { %v3220_v38 = vpop.eup %3219 }
0x28e4   :  { %v2108_v16 = vmul.f32 %v3220_v38, %v2018_v35  ;;  %v3075_v35 = vld [vmem:[%s3801_s10 + $0x30] sm:$0xff]  }
0x2947   :  { %v2111_v57 = vpop.permute.xlu1 %2110 }
0x2948   :  { %v2113_v45 = vmul.f32 %v3220_v38, %v2111_v57 }
0x294a   :  { %2115 = vrot.lane.b32.xlu0 %v2113_v45, %s3246_s21 }
0x29bc   :  { %v2116_v52 = vpop.permute.xlu0 %2115 }
0x29bd   :  { %v2118_v10 = vadd.f32 %v2116_v52, %v2108_v16 }
0x29bf   :  { %3221 = vtanh.f32 %v2118_v10 }
0x29c9   :  { %v3222_v7 = vpop.eup %3221 }
0x29ca   :  { %2121 = vrot.lane.b32.xlu1 %v3222_v7, %s3245_s6 }
0x2a3c   :  { %v2122_v9 = vpop.permute.xlu1 %2121 }
0x2a3d   :  { %v2124_v40 = vmul.f32 %v3220_v38, %v2122_v9 }
0x2a3f   :  { %2126 = vrot.lane.b32.xlu0 %v2124_v40, %s3246_s21 }
0x2ab1   :  { %v2127_v11 = vpop.permute.xlu0 %2126 }
0x2ab2   :  { %2907 = vmatmul.mubr.msk.f32.vlgmr.msra.gmra.mrb[44].mxu0 %vm397_vm15, %v2127_v11 }
0x2ab3   :  { %2936 = vmatprep.mubr.msk.bf16.mxu0 %vm3243_vm2, %v3242_v5  ;;  %2921 = vmatpush3.bf16.msra.mxu0 %v3069_v54 }
0x2ab4   :  { %2922 = vmatprep.subr.bf16.mxu0 %v3242_v5 }
0x2ab7   :  { %2923 = vmatpush3.bf16.msra.mxu0 %v3070_v55 }
0x2ab8   :  { %2924 = vmatprep.subr.bf16.mxu0 %v3242_v5 }
0x2b85   :  { %v2196_v61 = vpop.f32.mrb[44].mxu0 }
0x2b86   :  { %v2200_v17 = vadd.f32 %v2196_v61, %v1416_v14  ;;  %v2908_v20 = vpop.f32.mrb[45].mxu0 }
0x2b88   :  { %3223 = vtanh.f32 %v2200_v17  ;;  %v2517_v22 = vmul.f32 -1.442695, %v2200_v17 }
0x2b8a   :  { %3225 = vpow2.f32 %v2517_v22 }
0x2b92   :  { %v3224_v21 = vpop.eup %3223 }
0x2b93   :  { %2210 = vrot.lane.b32.xlu1 %v3224_v21, %s3245_s6 }
0x2b94   :  { %v3226_v23 = vpop.eup %3225 }
0x2b95   :  { %v2204_v24 = vadd.f32 1.0, %v3226_v23 }
0x2b97   :  { %3227 = vrcp.f32 %v2204_v24 }
0x2ba1   :  { %v3228_v27 = vpop.eup %3227 }
0x2ba2   :  { %v2208_v47 = vmul.f32 %v3228_v27, %v2118_v10 }
0x2c05   :  { %v2211_v30 = vpop.permute.xlu1 %2210 }
0x2c06   :  { %v2213_v32 = vmul.f32 %v3228_v27, %v2211_v30 }
0x2c08   :  { %2215 = vrot.lane.b32.xlu0 %v2213_v32, %s3246_s21 }
0x2c7a   :  { %v2216_v33 = vpop.permute.xlu0 %2215 }
0x2c7b   :  { %v2218_v18 = vadd.f32 %v2216_v33, %v2208_v47 }
0x2c7d   :  { %3229 = vtanh.f32 %v2218_v18 }
0x2c87   :  { %v3230_v28 = vpop.eup %3229 }
0x2c88   :  { %2221 = vrot.lane.b32.xlu1 %v3230_v28, %s3245_s6 }
0x2cfa   :  { %v2222_v37 = vpop.permute.xlu1 %2221 }
0x2cfb   :  { %v2224_v31 = vmul.f32 %v3228_v27, %v2222_v37 }
0x2cfd   :  { %2226 = vrot.lane.b32.xlu0 %v2224_v31, %s3246_s21 }
0x2d6f   :  { %v2227_v39 = vpop.permute.xlu0 %2226 }
0x2d70   :  { %2918 = vmatmul.mubr.msk.f32.vlgmr.msra.gmra.mrb[40].mxu1 %vm397_vm15, %v2227_v39 }
0x2e43   :  { %v2296_v42 = vpop.f32.mrb[40].mxu1 }
0x2e44   :  { %v2300_v43 = vadd.f32 %v2296_v42, %v1421_v41  ;;  %v2919_v44 = vpop.f32.mrb[41].mxu1 }
0x2e46   :  { %3231 = vtanh.f32 %v2300_v43  ;;  %v2519_v48 = vmul.f32 -1.442695, %v2300_v43 }
0x2e48   :  { %3233 = vpow2.f32 %v2519_v48 }
0x2e50   :  { %v3232_v46 = vpop.eup %3231 }
0x2e51   :  { %2310 = vrot.lane.b32.xlu1 %v3232_v46, %s3245_s6 }
0x2e52   :  { %v3234_v12 = vpop.eup %3233 }
0x2e53   :  { %v2304_v49 = vadd.f32 1.0, %v3234_v12 }
0x2e55   :  { %3235 = vrcp.f32 %v2304_v49 }
0x2e5f   :  { %v3236_v50 = vpop.eup %3235 }
0x2e60   :  { %v2308_v29 = vmul.f32 %v3236_v50, %v2218_v18 }
0x2ec3   :  { %v2311_v19 = vpop.permute.xlu1 %2310 }
0x2ec4   :  { %v2313_v51 = vmul.f32 %v3236_v50, %v2311_v19 }
0x2ec6   :  { %2315 = vrot.lane.b32.xlu0 %v2313_v51, %s3246_s21 }
0x2eca   :  { %2326 = vrot.lane.b32.xlu0 %v3697_v36, %s3246_s21  ;;  %v3071_v36 = vld [vmem:[%s3801_s10 + $0x10] sm:$0xff]  }
0x2ecb   :  { %2925 = vmatpush3.bf16.msra.mxu0 %v3071_v36 }
0x2ecc   :  { %2926 = vmatprep.subr.bf16.mxu0 %v3242_v5 }
0x2ecf   :  { %2927 = vmatpush3.bf16.msra.mxu0 %v3072_v56 }
0x2ed0   :  { %2928 = vmatprep.subr.bf16.mxu0 %v3242_v5 }
0x2ed3   :  { %2929 = vmatpush3.bf16.msra.mxu0 %v3073_v58 }
0x2ed4   :  { %2930 = vmatprep.subr.bf16.mxu0 %v3242_v5 }
0x2ed7   :  { %2931 = vmatpush3.bf16.msra.mxu0 %v3074_v13 }
0x2ed8   :  { %2932 = vmatprep.subr.bf16.mxu0 %v3242_v5 }
0x2edb   :  { %2933 = vmatpush3.bf16.msra.mxu0 %v3075_v35 }
0x2edc   :  { %2934 = vmatprep.subr.bf16.mxu0 %v3242_v5 }
0x2edf   :  { %2935 = vmatpush3.bf16.msra.mxu0 %v3076_v26 }
0x2f38   :  { %v2316_v8 = vpop.permute.xlu0 %2315 }
0x2f39   :  { %v2318_v53 = vadd.f32 %v2316_v8, %v2308_v29 }
0x2f3b   :  { %3237 = vtanh.f32 %v2318_v53  ;;  %2334 = vrot.lane.b32.xlu0 %v2318_v53, %s3245_s6 }
0x2f3c   :  { %v2327_v62 = vpop.permute.xlu0 %2326 }
0x2f3d   :  { %v2337_v0 = vsel %vm397_vm15, %v2327_v62, %v3672_v63 }
0x2f45   :  { %v3238_v34 = vpop.eup %3237 }
0x2f46   :  { %2321 = vrot.lane.b32.xlu1 %v3238_v34, %s3245_s6 }
0x2fad   :  { %v2335_v25 = vpop.permute.xlu0 %2334 }
0x2fb8   :  { %v2322_v59 = vpop.permute.xlu1 %2321 }
0x2fb9   :  { %v2324_v60 = vmul.f32 %v3236_v50, %v2322_v59 }
0x2fbb   :  { %2330 = vrot.lane.b32.xlu1 %v2324_v60, %s3247_s24 }
0x302d   :  { %v2331_v1 = vpop.permute.xlu1 %2330 }
0x302e   :  { %v2339_v2 = vsel %vm2338_vm0, %v2337_v0, %v2331_v1 }
0x302f   :  { %v2341_v3 = vsel %vm2340_vm1, %v2339_v2, %v2335_v25 }
0x3030   :  { %3239 = vtanh.f32 %v2341_v3 }
0x303a   :  { %v3240_v5 = vpop.eup %3239 }
0x303b   :  { %v2343_v6 = vpack.c.bf16 %v3240_v5, %v3240_v5 }
0x303d   :  { %2937 = vmatmul.mubr.bf16.vlgmr.msra.gmra.mrb[48].mxu0 %v2343_v6 }
0x3110   :  { %v2449_v4 = vpop.f32.mrb[48].mxu0 }
0x3111   :  { %v2450_v38 = vadd.f32 %v2520_v15, %v2449_v4  ;;  %v2938_v57 = vpop.f32.mrb[49].mxu0 }
0x3112   :  { %v2452_v45 = vpop.f32.mrb[50].mxu0 }
0x3113   :  { %2455 = vst.msk [vmem:[%s3803_s12] sm:$0xff] %vm397_vm15, %v2450_v38  ;;  %v2939_v63 = vpop.f32.mrb[51].mxu0 }

</bundles_post_ra>
